<compile_context>
chip_gen: v7x
topology: tpu7x:2x2x1
jax: 0.10.0
libtpu: 0.0.40
codegen_flags: <defaults>
</compile_context>

<pallas_src>
import math
from functools import partial

import jax
import jax.numpy as jnp
from jax import lax
from jax.experimental import pallas as pl
from jax.experimental.pallas import tpu as pltpu

EPS = 1e-5  # nn.LayerNorm default eps
_MiB = 1024 * 1024

# --------------------------------------------------------------------------
# small utilities
# --------------------------------------------------------------------------
_VMEM_LIMIT_CACHE = None


def _get_vmem_limit():
    """Scoped-VMEM limit with headroom, derived per TPU generation."""
    global _VMEM_LIMIT_CACHE
    if _VMEM_LIMIT_CACHE is None:
        limit = 48 * _MiB          # safe everywhere (v7x physical VMEM = 64 MiB)
        try:
            cap = getattr(pltpu.get_tpu_info(), "vmem_capacity_bytes", None)
            if cap:
                # 3/4 of physical: ~48 MiB on v7x, ~96 MiB on v5e / v6e.
                limit = max(32 * _MiB, (int(cap) * 3) // 4)
        except Exception:
            pass
        _VMEM_LIMIT_CACHE = limit
    return _VMEM_LIMIT_CACHE


def _cparams(dims):
    return pltpu.CompilerParams(dimension_semantics=dims,
                                vmem_limit_bytes=_get_vmem_limit())


def _make_weight_pipe():
    # Single-buffer grid-invariant operands (weights / biases / LN params):
    # halves their VMEM footprint, freeing budget for larger row tiles.
    if not hasattr(pl, "Buffered"):
        return None
    try:
        return pl.Buffered(buffer_count=1)
    except TypeError:
        try:
            return pl.Buffered(1)
        except Exception:
            return None


_WEIGHT_PIPE = _make_weight_pipe()


def _const_spec(shape):
    """BlockSpec for a grid-invariant (weight-like) operand, single-buffered."""
    idx = lambda *_: (0,) * len(shape)
    if _WEIGHT_PIPE is not None:
        try:
            return pl.BlockSpec(shape, idx, pipeline_mode=_WEIGHT_PIPE)
        except TypeError:
            pass
    return pl.BlockSpec(shape, idx)


def _seq_tile(length, target):
    """Sequence-tile length: whole axis if it fits, else the 8-aligned target.
    A ragged tail is handled by the cdiv grid (boundary blocks are masked)."""
    if length <= target:
        return length
    assert target % 8 == 0
    return target


# --------------------------------------------------------------------------
# in-kernel helpers (all elementwise math stays in f32; cast only at the MXU)
# --------------------------------------------------------------------------
def _layernorm(x, gamma, beta):
    mu = jnp.mean(x, axis=-1, keepdims=True)
    xc = x - mu
    var = jnp.mean(xc * xc, axis=-1, keepdims=True)
    return xc * lax.rsqrt(var + EPS) * gamma + beta


def _gelu_exact(x):
    # exact (erf-based) GELU matching nn.GELU(); erf via Abramowitz & Stegun
    # 7.1.26 (|err| < 1.5e-7 ~ f32 eps), built only from Mosaic-friendly ops.
    z = x * 0.7071067811865476
    a = jnp.abs(z)
    t = 1.0 / (1.0 + 0.3275911 * a)
    poly = t * (0.254829592 + t * (-0.284496736 + t * (1.421413741 +
           t * (-1.453152027 + t * 1.061405429))))
    erf_abs = 1.0 - poly * jnp.exp(-a * a)
    erf_z = jnp.where(z >= 0.0, erf_abs, -erf_abs)
    return 0.5 * x * (1.0 + erf_z)


# --------------------------------------------------------------------------
# kernel 1: LayerNorm1 + fused QKV projection, emitted head-major
# --------------------------------------------------------------------------
def ln_qkv_kernel(x_ref, g_ref, b_ref, w_ref, bias_ref, q_ref, k_ref, v_ref,
                  *, num_heads, head_dim):
    # x:(1,tl,E)  W:(E,3E)  q/k/v out blocks:(1,H,tl,hd)
    E = num_heads * head_dim
    hln = _layernorm(x_ref[0], g_ref[...], b_ref[...])                  # f32
    y = (jnp.dot(hln.astype(w_ref.dtype), w_ref[...],
                 preferred_element_type=jnp.float32) + bias_ref[...])   # (tl,3E)
    for hh in range(num_heads):                 # static split into head blocks
        c = hh * head_dim
        q_ref[0, hh] = y[:, c:c + head_dim].astype(q_ref.dtype)
        k_ref[0, hh] = y[:, E + c:E + c + head_dim].astype(k_ref.dtype)
        v_ref[0, hh] = y[:, 2 * E + c:2 * E + c + head_dim].astype(v_ref.dtype)


# --------------------------------------------------------------------------
# kernel 2: attention, grid=(N, L/tq, H), head axis innermost ("arbitrary")
# --------------------------------------------------------------------------
def attn_kernel(q_ref, k_ref, v_ref, ctx_ref, *p_out,
                num_heads, mm_dtype, need_weights):
    h = pl.program_id(2)
    q = q_ref[0, 0]                                   # (tq, hd), already scaled
    k = k_ref[0, h]                                   # (L, hd)  resident block
    v = v_ref[0, h]                                   # (L, hd)
    # q @ k^T without an explicit transpose: contract the last dims.
    s = lax.dot_general(q, k, dimension_numbers=(((1,), (1,)), ((), ())),
                        preferred_element_type=jnp.float32)             # (tq,L)
    m = jnp.max(s, axis=-1, keepdims=True)
    e = jnp.exp(s - m)
    # EUP reciprocal (free VLIW slot) instead of a full (tq, L) divide.
    r = pl.reciprocal(jnp.sum(e, axis=-1, keepdims=True), approx=True)  # (tq,1)
    ctx = jnp.dot(e.astype(mm_dtype), v, preferred_element_type=jnp.float32)
    ctx_ref[0, 0] = (ctx * r).astype(ctx_ref.dtype)   # whole-block, lane-dense
    if need_weights:
        p_ref = p_out[0]

        @pl.when(h == 0)
        def _():
            p_ref[...] = jnp.zeros_like(p_ref)

        # head-averaged attention weights, accumulated in the resident block
        p_ref[0] += (e * r) * (1.0 / num_heads)


# --------------------------------------------------------------------------
# kernel 3: out_proj + residual + LayerNorm2 + fc1 + GELU + fc2 + residual
# --------------------------------------------------------------------------
def out_ffn_kernel(ctx_ref, res_ref, wo_ref, bo_ref, g2_ref, be2_ref,
                   w1_ref, b1_ref, w2_ref, bf2_ref, o_ref, *, num_heads):
    # Re-assemble the per-head ctx stripes into a (tl, E) row block (static
    # lane concat, matches PyTorch's head-concat ordering).
    pieces = [ctx_ref[0, hh] for hh in range(num_heads)]
    ctx = pieces[0] if num_heads == 1 else jnp.concatenate(pieces, axis=-1)
    x1 = (jnp.dot(ctx.astype(wo_ref.dtype), wo_ref[...],
                  preferred_element_type=jnp.float32)
          + bo_ref[...] + res_ref[0])                                   # (tl,E)
    hln = _layernorm(x1, g2_ref[...], be2_ref[...]).astype(w1_ref.dtype)
    a = (jnp.dot(hln, w1_ref[...], preferred_element_type=jnp.float32)
         + b1_ref[...])                                                 # (tl,F)
    g = _gelu_exact(a).astype(w2_ref.dtype)
    o_ref[0] = (x1 + jnp.dot(g, w2_ref[...], preferred_element_type=jnp.float32)
                + bf2_ref[...])


# --------------------------------------------------------------------------
# wrapper
# --------------------------------------------------------------------------
def transformer_layer(x, params, num_heads, *, matmul_dtype=jnp.bfloat16,
                      need_weights=True, proj_row_tile=512, ffn_row_tile=None,
                      q_tile=256):
    """x: (L, N, E) float32.  Returns (y (L,N,E), attn (N,L,L) or None).

    matmul_dtype (default bf16) is used for MXU operands and the q/k/v/ctx
    intermediates; all accumulation and elementwise math stays in f32.
    Pass matmul_dtype=jnp.float32 for f32-faithful PyTorch numerics.
    """
    L, N, E = x.shape
    H = num_heads
    assert E % H == 0, "embed_dim must be divisible by num_heads"
    hd = E // H
    F = params["fc1_w_t"].shape[1]
    f32 = jnp.float32
    ms = jnp.dtype(matmul_dtype).itemsize

    # FFN row tile: bigger on v5e/v6e (96 MiB budget), smaller on v7x (48 MiB).
    if ffn_row_tile is None:
        ffn_row_tile = 512 if _get_vmem_limit() >= 80 * _MiB else 256

    # Batch-major working layout so per-batch attention blocks are contiguous.
    # TODO(synk): fold this transpose (and the exit one) into BlockSpecs once
    # E%128-aligned strided blocks are guaranteed.
    xb = jnp.transpose(x, (1, 0, 2))                        # (N, L, E) f32

    # Fold the 1/sqrt(head_dim) query scale into the Q columns of the fused
    # in-projection; cast weights to the MXU dtype once on the host.
    scale = float(hd) ** -0.5
    col_scale = jnp.concatenate(
        [jnp.full((1, E), scale, f32), jnp.ones((1, 2 * E), f32)], axis=1)
    w_in = (params["in_proj_w_t"] * col_scale).astype(matmul_dtype)
    b_in = params["in_proj_b"] * col_scale
    w_out = params["out_proj_w_t"].astype(matmul_dtype)
    w_fc1 = params["fc1_w_t"].astype(matmul_dtype)
    w_fc2 = params["fc2_w_t"].astype(matmul_dtype)

    # ---- kernel 1: LN1 + QKV projection, head-major outputs ---------------
    tl = _seq_tile(L, proj_row_tile)
    nl = pl.cdiv(L, tl)
    qkv_shape = jax.ShapeDtypeStruct((N, H, L, hd), matmul_dtype)
    head_out_spec = lambda: pl.BlockSpec((1, H, tl, hd), lambda n, l: (n, 0, l, 0))
    q_h, k_h, v_h = pl.pallas_call(
        partial(ln_qkv_kernel, num_heads=H, head_dim=hd),
        grid=(N, nl),
        out_shape=(qkv_shape, qkv_shape, qkv_shape),
        in_specs=[pl.BlockSpec((1, tl, E), lambda n, l: (n, l, 0)),
                  _const_spec((1, E)),
                  _const_spec((1, E)),
                  _const_spec((E, 3 * E)),
                  _const_spec((1, 3 * E))],
        out_specs=(head_out_spec(), head_out_spec(), head_out_spec()),
        compiler_params=_cparams(("parallel", "parallel")),
        cost_estimate=pl.CostEstimate(
            flops=2 * N * L * E * 3 * E + 10 * N * L * E,
            transcendentals=N * L,
            bytes_accessed=4 * N * L * E + ms * (3 * E * E + 3 * N * L * E)),
    )(xb, params["ln1_w"], params["ln1_b"], w_in, b_in)

    # ---- kernel 2: attention (query-tiled, one head per step) -------------
    tq = _seq_tile(L, q_tile)
    nq = pl.cdiv(L, tq)
    ctx_shape = jax.ShapeDtypeStruct((N, H, L, hd), matmul_dtype)
    ctx_spec = pl.BlockSpec((1, 1, tq, hd), lambda n, qi, h: (n, h, qi, 0))
    if need_weights:
        out_shape = (ctx_shape, jax.ShapeDtypeStruct((N, L, L), f32))
        out_specs = (ctx_spec,
                     pl.BlockSpec((1, tq, L), lambda n, qi, h: (n, qi, 0)))
    else:
        out_shape, out_specs = ctx_shape, ctx_spec
    outs = pl.pallas_call(
        partial(attn_kernel, num_heads=H, mm_dtype=matmul_dtype,
                need_weights=need_weights),
        grid=(N, nq, H),
        out_shape=out_shape,
        in_specs=[pl.BlockSpec((1, 1, tq, hd), lambda n, qi, h: (n, h, qi, 0)),
                  pl.BlockSpec((1, H, L, hd), lambda n, qi, h: (n, 0, 0, 0)),
                  pl.BlockSpec((1, H, L, hd), lambda n, qi, h: (n, 0, 0, 0))],
        out_specs=out_specs,
        compiler_params=_cparams(("parallel", "parallel", "arbitrary")),
        cost_estimate=pl.CostEstimate(
            flops=4 * N * H * L * L * hd + 8 * N * H * L * L,
            transcendentals=N * H * L * L,
            bytes_accessed=ms * 4 * N * L * E + 4 * N * L * L),
    )(q_h, k_h, v_h)
    if need_weights:
        ctx_h, attn_w = outs
    else:
        ctx_h, attn_w = outs, None

    # ---- kernel 3: out_proj + residual + LN2 + FFN + residual (fused) -----
    tf_ = _seq_tile(L, ffn_row_tile)
    nf = pl.cdiv(L, tf_)
    yb = pl.pallas_call(
        partial(out_ffn_kernel, num_heads=H),
        grid=(N, nf),
        out_shape=jax.ShapeDtypeStruct((N, L, E), f32),
        in_specs=[pl.BlockSpec((1, H, tf_, hd), lambda n, l: (n, 0, l, 0)),
                  pl.BlockSpec((1, tf_, E), lambda n, l: (n, l, 0)),
                  _const_spec((E, E)),
                  _const_spec((1, E)),
                  _const_spec((1, E)),
                  _const_spec((1, E)),
                  _const_spec((E, F)),
                  _const_spec((1, F)),
                  _const_spec((F, E)),
                  _const_spec((1, E))],
        out_specs=pl.BlockSpec((1, tf_, E), lambda n, l: (n, l, 0)),
        compiler_params=_cparams(("parallel", "parallel")),
        cost_estimate=pl.CostEstimate(
            flops=2 * N * L * E * E + 4 * N * L * E * F + 30 * N * L * F,
            transcendentals=N * L * (F + 1),
            bytes_accessed=(8 * N * L * E
                            + ms * (N * L * E + E * E + 2 * E * F))),
    )(ctx_h, xb, w_out, params["out_proj_b"], params["ln2_w"], params["ln2_b"],
      w_fc1, params["fc1_b"], w_fc2, params["fc2_b"])

    y = jnp.transpose(yb, (1, 0, 2))                        # back to (L, N, E)
    return y, attn_w


# --------------------------------------------------------------------------
# deterministic parameter construction (shapes from TransformerLayer.__init__)
# --------------------------------------------------------------------------
def make_params(key, embed_dim, ffn_embed_dim):
    E, F = embed_dim, ffn_embed_dim
    ks = jax.random.split(key, 12)
    f32 = jnp.float32

    def nrm(k, shape, s):
        return (jax.random.normal(k, shape, f32) * s).astype(f32)

    params = {
        # attn_layernorm
        "ln1_w": (1.0 + nrm(ks[0], (1, E), 0.1)),
        "ln1_b": nrm(ks[1], (1, E), 0.1),
        # self_attn in_proj (3E, E) stored transposed as (E, 3E)
        "in_proj_w_t": nrm(ks[2], (3 * E, E), 1.0 / math.sqrt(E)).T,
        "in_proj_b": nrm(ks[3], (1, 3 * E), 0.02),
        # self_attn out_proj (E, E) stored transposed
        "out_proj_w_t": nrm(ks[4], (E, E), 1.0 / math.sqrt(E)).T,
        "out_proj_b": nrm(ks[5], (1, E), 0.02),
        # ffn LayerNorm
        "ln2_w": (1.0 + nrm(ks[6], (1, E), 0.1)),
        "ln2_b": nrm(ks[7], (1, E), 0.1),
        # ffn Linear(E -> F), stored transposed (E, F)
        "fc1_w_t": nrm(ks[8], (F, E), 1.0 / math.sqrt(E)).T,
        "fc1_b": nrm(ks[9], (1, F), 0.02),
        # ffn Linear(F -> E), stored transposed (F, E)
        "fc2_w_t": nrm(ks[10], (E, F), 1.0 / math.sqrt(F)).T,
        "fc2_b": nrm(ks[11], (1, E), 0.02),
    }
    return jax.tree_util.tree_map(jnp.asarray, params)


if __name__ == "__main__":
    # small shapes: seq=8, batch=2, embed_dim=32, num_heads=4, ffn_embed_dim=64
    L, N, E, H, F = 8, 2, 32, 4, 64

    key = jax.random.PRNGKey(0)
    k_x, k_p = jax.random.split(key)
    x = jax.random.normal(k_x, (L, N, E), jnp.float32)  # (seq, batch, embed)
    params = make_params(k_p, E, F)

    fwd = jax.jit(partial(transformer_layer, num_heads=H))
    y, attn = fwd(x, params)
    jax.block_until_ready((y, attn))

    assert y.shape == (L, N, E) and attn.shape == (N, L, L)
    assert bool(jnp.all(jnp.isfinite(y))) and bool(jnp.all(jnp.isfinite(attn)))
    # attention rows are (head-averaged) softmax distributions -> ~1
    # (tolerance loosened for the approximate EUP reciprocal)
    assert bool(jnp.allclose(attn.sum(-1), 1.0, atol=5e-3))

    # need_weights=False path: skips the (N, L, L) attention-map output.
    fwd_nw = jax.jit(partial(transformer_layer, num_heads=H, need_weights=False))
    y2, attn2 = fwd_nw(x, params)
    jax.block_until_ready(y2)
    assert attn2 is None and y2.shape == (L, N, E)
    assert bool(jnp.allclose(y, y2, atol=1e-5, rtol=1e-5))

    print("KERNEL_OK")
</pallas_src>

<mosaic_0001>
module attributes {stable_mosaic.version = 11 : i64} {
  func.func @ln_qkv_kernel(%arg0: i32, %arg1: i32, %arg2: memref<1x8x32xf32, #tpu.memory_space<vmem>>, %arg3: memref<1x32xf32, #tpu.memory_space<vmem>>, %arg4: memref<1x32xf32, #tpu.memory_space<vmem>>, %arg5: memref<32x96xbf16, #tpu.memory_space<vmem>>, %arg6: memref<1x96xf32, #tpu.memory_space<vmem>>, %arg7: memref<1x4x8x8xbf16, #tpu.memory_space<vmem>>, %arg8: memref<1x4x8x8xbf16, #tpu.memory_space<vmem>>, %arg9: memref<1x4x8x8xbf16, #tpu.memory_space<vmem>>) attributes {dimension_semantics = [#tpu.dimension_semantics<parallel>, #tpu.dimension_semantics<parallel>], iteration_bounds = array<i64: 2, 1>, scalar_prefetch = 0 : i64, scratch_operands = 0 : i64, tpu.core_type = #tpu.core_type<tc>, window_params = [{transform_indices = @transform_0, window_bounds = array<i64: 1, 8, 32>}, {pipeline_mode = #tpu.pipeline_mode<synchronous>, transform_indices = @transform_1, window_bounds = array<i64: 1, 32>}, {pipeline_mode = #tpu.pipeline_mode<synchronous>, transform_indices = @transform_2, window_bounds = array<i64: 1, 32>}, {pipeline_mode = #tpu.pipeline_mode<synchronous>, transform_indices = @transform_3, window_bounds = array<i64: 32, 96>}, {pipeline_mode = #tpu.pipeline_mode<synchronous>, transform_indices = @transform_4, window_bounds = array<i64: 1, 96>}, {transform_indices = @transform_5, window_bounds = array<i64: 1, 4, 8, 8>}, {transform_indices = @transform_6, window_bounds = array<i64: 1, 4, 8, 8>}, {transform_indices = @transform_7, window_bounds = array<i64: 1, 4, 8, 8>}]} {
    %c0 = arith.constant 0 : index
    %c0_0 = arith.constant 0 : index
    %c0_1 = arith.constant 0 : index
    %0 = vector.load %arg2[%c0, %c0_0, %c0_1] : memref<1x8x32xf32, #tpu.memory_space<vmem>>, vector<1x8x32xf32>
    %1 = vector.shape_cast %0 : vector<1x8x32xf32> to vector<8x32xf32>
    %c0_2 = arith.constant 0 : index
    %c0_3 = arith.constant 0 : index
    %2 = vector.load %arg3[%c0_2, %c0_3] : memref<1x32xf32, #tpu.memory_space<vmem>>, vector<1x32xf32>
    %c0_4 = arith.constant 0 : index
    %c0_5 = arith.constant 0 : index
    %3 = vector.load %arg4[%c0_4, %c0_5] : memref<1x32xf32, #tpu.memory_space<vmem>>, vector<1x32xf32>
    %cst = arith.constant dense<0.000000e+00> : vector<8xf32>
    %4 = vector.multi_reduction <add>, %1, %cst [1] : vector<8x32xf32> to vector<8xf32>
    %5 = vector.shape_cast %4 : vector<8xf32> to vector<8x1xf32>
    %cst_6 = arith.constant 3.200000e+01 : f32
    %6 = vector.broadcast %cst_6 : f32 to vector<8x1xf32>
    %7 = arith.divf %5, %6 : vector<8x1xf32>
    %8 = vector.broadcast %7 : vector<8x1xf32> to vector<8x32xf32>
    %9 = arith.subf %1, %8 : vector<8x32xf32>
    %10 = arith.mulf %9, %9 : vector<8x32xf32>
    %cst_7 = arith.constant dense<0.000000e+00> : vector<8xf32>
    %11 = vector.multi_reduction <add>, %10, %cst_7 [1] : vector<8x32xf32> to vector<8xf32>
    %12 = vector.shape_cast %11 : vector<8xf32> to vector<8x1xf32>
    %cst_8 = arith.constant 3.200000e+01 : f32
    %13 = vector.broadcast %cst_8 : f32 to vector<8x1xf32>
    %14 = arith.divf %12, %13 : vector<8x1xf32>
    %cst_9 = arith.constant 9.99999974E-6 : f32
    %15 = vector.broadcast %cst_9 : f32 to vector<8x1xf32>
    %16 = arith.addf %14, %15 : vector<8x1xf32>
    %17 = math.rsqrt %16 : vector<8x1xf32>
    %18 = vector.broadcast %17 : vector<8x1xf32> to vector<8x32xf32>
    %19 = arith.mulf %9, %18 : vector<8x32xf32>
    %20 = vector.broadcast %2 : vector<1x32xf32> to vector<8x32xf32>
    %21 = arith.mulf %19, %20 : vector<8x32xf32>
    %22 = vector.broadcast %3 : vector<1x32xf32> to vector<8x32xf32>
    %23 = arith.addf %21, %22 : vector<8x32xf32>
    %24 = arith.truncf %23 : vector<8x32xf32> to vector<8x32xbf16>
    %c0_10 = arith.constant 0 : index
    %c0_11 = arith.constant 0 : index
    %25 = vector.load %arg5[%c0_10, %c0_11] : memref<32x96xbf16, #tpu.memory_space<vmem>>, vector<32x96xbf16>
    %cst_12 = arith.constant dense<0.000000e+00> : vector<8x96xf32>
    %26 = tpu.matmul %24, %25, %cst_12 {dimension_numbers = #tpu.dot_dimension_numbers<[1], [0], [0], [1], [0, 0, 1, 1], [], []>} : vector<8x32xbf16>, vector<32x96xbf16>, vector<8x96xf32> -> vector<8x96xf32>
    %c0_13 = arith.constant 0 : index
    %c0_14 = arith.constant 0 : index
    %27 = vector.load %arg6[%c0_13, %c0_14] : memref<1x96xf32, #tpu.memory_space<vmem>>, vector<1x96xf32>
    %28 = vector.broadcast %27 : vector<1x96xf32> to vector<8x96xf32>
    %29 = arith.addf %26, %28 : vector<8x96xf32>
    %30 = vector.extract_strided_slice %29 {offsets = [0, 0], sizes = [8, 8], strides = [1, 1]} : vector<8x96xf32> to vector<8x8xf32>
    %31 = arith.truncf %30 : vector<8x8xf32> to vector<8x8xbf16>
    %c0_15 = arith.constant 0 : index
    %c0_16 = arith.constant 0 : index
    %c0_17 = arith.constant 0 : index
    %c0_18 = arith.constant 0 : index
    %32 = vector.load %arg7[%c0_15, %c0_16, %c0_17, %c0_18] : memref<1x4x8x8xbf16, #tpu.memory_space<vmem>>, vector<1x1x8x8xbf16>
    %33 = vector.shape_cast %32 : vector<1x1x8x8xbf16> to vector<8x8xbf16>
    %34 = vector.shape_cast %31 : vector<8x8xbf16> to vector<1x1x8x8xbf16>
    tpu.vector_store %arg7[%c0_15, %c0_16, %c0_17, %c0_18], %34 {strides = array<i32>} : memref<1x4x8x8xbf16, #tpu.memory_space<vmem>>, vector<1x1x8x8xbf16>,
    %35 = vector.extract_strided_slice %29 {offsets = [0, 32], sizes = [8, 8], strides = [1, 1]} : vector<8x96xf32> to vector<8x8xf32>
    %36 = arith.truncf %35 : vector<8x8xf32> to vector<8x8xbf16>
    %c0_19 = arith.constant 0 : index
    %c0_20 = arith.constant 0 : index
    %c0_21 = arith.constant 0 : index
    %c0_22 = arith.constant 0 : index
    %37 = vector.load %arg8[%c0_19, %c0_20, %c0_21, %c0_22] : memref<1x4x8x8xbf16, #tpu.memory_space<vmem>>, vector<1x1x8x8xbf16>
    %38 = vector.shape_cast %37 : vector<1x1x8x8xbf16> to vector<8x8xbf16>
    %39 = vector.shape_cast %36 : vector<8x8xbf16> to vector<1x1x8x8xbf16>
    tpu.vector_store %arg8[%c0_19, %c0_20, %c0_21, %c0_22], %39 {strides = array<i32>} : memref<1x4x8x8xbf16, #tpu.memory_space<vmem>>, vector<1x1x8x8xbf16>,
    %40 = vector.extract_strided_slice %29 {offsets = [0, 64], sizes = [8, 8], strides = [1, 1]} : vector<8x96xf32> to vector<8x8xf32>
    %41 = arith.truncf %40 : vector<8x8xf32> to vector<8x8xbf16>
    %c0_23 = arith.constant 0 : index
    %c0_24 = arith.constant 0 : index
    %c0_25 = arith.constant 0 : index
    %c0_26 = arith.constant 0 : index
    %42 = vector.load %arg9[%c0_23, %c0_24, %c0_25, %c0_26] : memref<1x4x8x8xbf16, #tpu.memory_space<vmem>>, vector<1x1x8x8xbf16>
    %43 = vector.shape_cast %42 : vector<1x1x8x8xbf16> to vector<8x8xbf16>
    %44 = vector.shape_cast %41 : vector<8x8xbf16> to vector<1x1x8x8xbf16>
    tpu.vector_store %arg9[%c0_23, %c0_24, %c0_25, %c0_26], %44 {strides = array<i32>} : memref<1x4x8x8xbf16, #tpu.memory_space<vmem>>, vector<1x1x8x8xbf16>,
    %45 = vector.extract_strided_slice %29 {offsets = [0, 8], sizes = [8, 8], strides = [1, 1]} : vector<8x96xf32> to vector<8x8xf32>
    %46 = arith.truncf %45 : vector<8x8xf32> to vector<8x8xbf16>
    %c0_27 = arith.constant 0 : index
    %c1 = arith.constant 1 : index
    %c0_28 = arith.constant 0 : index
    %c0_29 = arith.constant 0 : index
    %47 = vector.load %arg7[%c0_27, %c1, %c0_28, %c0_29] : memref<1x4x8x8xbf16, #tpu.memory_space<vmem>>, vector<1x1x8x8xbf16>
    %48 = vector.shape_cast %47 : vector<1x1x8x8xbf16> to vector<8x8xbf16>
    %49 = vector.shape_cast %46 : vector<8x8xbf16> to vector<1x1x8x8xbf16>
    tpu.vector_store %arg7[%c0_27, %c1, %c0_28, %c0_29], %49 {strides = array<i32>} : memref<1x4x8x8xbf16, #tpu.memory_space<vmem>>, vector<1x1x8x8xbf16>,
    %50 = vector.extract_strided_slice %29 {offsets = [0, 40], sizes = [8, 8], strides = [1, 1]} : vector<8x96xf32> to vector<8x8xf32>
    %51 = arith.truncf %50 : vector<8x8xf32> to vector<8x8xbf16>
    %c0_30 = arith.constant 0 : index
    %c1_31 = arith.constant 1 : index
    %c0_32 = arith.constant 0 : index
    %c0_33 = arith.constant 0 : index
    %52 = vector.load %arg8[%c0_30, %c1_31, %c0_32, %c0_33] : memref<1x4x8x8xbf16, #tpu.memory_space<vmem>>, vector<1x1x8x8xbf16>
    %53 = vector.shape_cast %52 : vector<1x1x8x8xbf16> to vector<8x8xbf16>
    %54 = vector.shape_cast %51 : vector<8x8xbf16> to vector<1x1x8x8xbf16>
    tpu.vector_store %arg8[%c0_30, %c1_31, %c0_32, %c0_33], %54 {strides = array<i32>} : memref<1x4x8x8xbf16, #tpu.memory_space<vmem>>, vector<1x1x8x8xbf16>,
    %55 = vector.extract_strided_slice %29 {offsets = [0, 72], sizes = [8, 8], strides = [1, 1]} : vector<8x96xf32> to vector<8x8xf32>
    %56 = arith.truncf %55 : vector<8x8xf32> to vector<8x8xbf16>
    %c0_34 = arith.constant 0 : index
    %c1_35 = arith.constant 1 : index
    %c0_36 = arith.constant 0 : index
    %c0_37 = arith.constant 0 : index
    %57 = vector.load %arg9[%c0_34, %c1_35, %c0_36, %c0_37] : memref<1x4x8x8xbf16, #tpu.memory_space<vmem>>, vector<1x1x8x8xbf16>
    %58 = vector.shape_cast %57 : vector<1x1x8x8xbf16> to vector<8x8xbf16>
    %59 = vector.shape_cast %56 : vector<8x8xbf16> to vector<1x1x8x8xbf16>
    tpu.vector_store %arg9[%c0_34, %c1_35, %c0_36, %c0_37], %59 {strides = array<i32>} : memref<1x4x8x8xbf16, #tpu.memory_space<vmem>>, vector<1x1x8x8xbf16>,
    %60 = vector.extract_strided_slice %29 {offsets = [0, 16], sizes = [8, 8], strides = [1, 1]} : vector<8x96xf32> to vector<8x8xf32>
    %61 = arith.truncf %60 : vector<8x8xf32> to vector<8x8xbf16>
    %c0_38 = arith.constant 0 : index
    %c2 = arith.constant 2 : index
    %c0_39 = arith.constant 0 : index
    %c0_40 = arith.constant 0 : index
    %62 = vector.load %arg7[%c0_38, %c2, %c0_39, %c0_40] : memref<1x4x8x8xbf16, #tpu.memory_space<vmem>>, vector<1x1x8x8xbf16>
    %63 = vector.shape_cast %62 : vector<1x1x8x8xbf16> to vector<8x8xbf16>
    %64 = vector.shape_cast %61 : vector<8x8xbf16> to vector<1x1x8x8xbf16>
    tpu.vector_store %arg7[%c0_38, %c2, %c0_39, %c0_40], %64 {strides = array<i32>} : memref<1x4x8x8xbf16, #tpu.memory_space<vmem>>, vector<1x1x8x8xbf16>,
    %65 = vector.extract_strided_slice %29 {offsets = [0, 48], sizes = [8, 8], strides = [1, 1]} : vector<8x96xf32> to vector<8x8xf32>
    %66 = arith.truncf %65 : vector<8x8xf32> to vector<8x8xbf16>
    %c0_41 = arith.constant 0 : index
    %c2_42 = arith.constant 2 : index
    %c0_43 = arith.constant 0 : index
    %c0_44 = arith.constant 0 : index
    %67 = vector.load %arg8[%c0_41, %c2_42, %c0_43, %c0_44] : memref<1x4x8x8xbf16, #tpu.memory_space<vmem>>, vector<1x1x8x8xbf16>
    %68 = vector.shape_cast %67 : vector<1x1x8x8xbf16> to vector<8x8xbf16>
    %69 = vector.shape_cast %66 : vector<8x8xbf16> to vector<1x1x8x8xbf16>
    tpu.vector_store %arg8[%c0_41, %c2_42, %c0_43, %c0_44], %69 {strides = array<i32>} : memref<1x4x8x8xbf16, #tpu.memory_space<vmem>>, vector<1x1x8x8xbf16>,
    %70 = vector.extract_strided_slice %29 {offsets = [0, 80], sizes = [8, 8], strides = [1, 1]} : vector<8x96xf32> to vector<8x8xf32>
    %71 = arith.truncf %70 : vector<8x8xf32> to vector<8x8xbf16>
    %c0_45 = arith.constant 0 : index
    %c2_46 = arith.constant 2 : index
    %c0_47 = arith.constant 0 : index
    %c0_48 = arith.constant 0 : index
    %72 = vector.load %arg9[%c0_45, %c2_46, %c0_47, %c0_48] : memref<1x4x8x8xbf16, #tpu.memory_space<vmem>>, vector<1x1x8x8xbf16>
    %73 = vector.shape_cast %72 : vector<1x1x8x8xbf16> to vector<8x8xbf16>
    %74 = vector.shape_cast %71 : vector<8x8xbf16> to vector<1x1x8x8xbf16>
    tpu.vector_store %arg9[%c0_45, %c2_46, %c0_47, %c0_48], %74 {strides = array<i32>} : memref<1x4x8x8xbf16, #tpu.memory_space<vmem>>, vector<1x1x8x8xbf16>,
    %75 = vector.extract_strided_slice %29 {offsets = [0, 24], sizes = [8, 8], strides = [1, 1]} : vector<8x96xf32> to vector<8x8xf32>
    %76 = arith.truncf %75 : vector<8x8xf32> to vector<8x8xbf16>
    %c0_49 = arith.constant 0 : index
    %c3 = arith.constant 3 : index
    %c0_50 = arith.constant 0 : index
    %c0_51 = arith.constant 0 : index
    %77 = vector.load %arg7[%c0_49, %c3, %c0_50, %c0_51] : memref<1x4x8x8xbf16, #tpu.memory_space<vmem>>, vector<1x1x8x8xbf16>
    %78 = vector.shape_cast %77 : vector<1x1x8x8xbf16> to vector<8x8xbf16>
    %79 = vector.shape_cast %76 : vector<8x8xbf16> to vector<1x1x8x8xbf16>
    tpu.vector_store %arg7[%c0_49, %c3, %c0_50, %c0_51], %79 {strides = array<i32>} : memref<1x4x8x8xbf16, #tpu.memory_space<vmem>>, vector<1x1x8x8xbf16>,
    %80 = vector.extract_strided_slice %29 {offsets = [0, 56], sizes = [8, 8], strides = [1, 1]} : vector<8x96xf32> to vector<8x8xf32>
    %81 = arith.truncf %80 : vector<8x8xf32> to vector<8x8xbf16>
    %c0_52 = arith.constant 0 : index
    %c3_53 = arith.constant 3 : index
    %c0_54 = arith.constant 0 : index
    %c0_55 = arith.constant 0 : index
    %82 = vector.load %arg8[%c0_52, %c3_53, %c0_54, %c0_55] : memref<1x4x8x8xbf16, #tpu.memory_space<vmem>>, vector<1x1x8x8xbf16>
    %83 = vector.shape_cast %82 : vector<1x1x8x8xbf16> to vector<8x8xbf16>
    %84 = vector.shape_cast %81 : vector<8x8xbf16> to vector<1x1x8x8xbf16>
    tpu.vector_store %arg8[%c0_52, %c3_53, %c0_54, %c0_55], %84 {strides = array<i32>} : memref<1x4x8x8xbf16, #tpu.memory_space<vmem>>, vector<1x1x8x8xbf16>,
    %85 = vector.extract_strided_slice %29 {offsets = [0, 88], sizes = [8, 8], strides = [1, 1]} : vector<8x96xf32> to vector<8x8xf32>
    %86 = arith.truncf %85 : vector<8x8xf32> to vector<8x8xbf16>
    %c0_56 = arith.constant 0 : index
    %c3_57 = arith.constant 3 : index
    %c0_58 = arith.constant 0 : index
    %c0_59 = arith.constant 0 : index
    %87 = vector.load %arg9[%c0_56, %c3_57, %c0_58, %c0_59] : memref<1x4x8x8xbf16, #tpu.memory_space<vmem>>, vector<1x1x8x8xbf16>
    %88 = vector.shape_cast %87 : vector<1x1x8x8xbf16> to vector<8x8xbf16>
    %89 = vector.shape_cast %86 : vector<8x8xbf16> to vector<1x1x8x8xbf16>
    tpu.vector_store %arg9[%c0_56, %c3_57, %c0_58, %c0_59], %89 {strides = array<i32>} : memref<1x4x8x8xbf16, #tpu.memory_space<vmem>>, vector<1x1x8x8xbf16>,
    return
  }
  func.func @transform_0(%arg0: i32, %arg1: i32) -> (i32, i32, i32) {
    %c0_i32 = arith.constant 0 : i32
    %c0_i32_0 = arith.constant 0 : i32
    return %arg0, %arg1, %c0_i32 : i32, i32, i32
  }
  func.func @transform_1(%arg0: i32, %arg1: i32) -> (i32, i32) {
    %c0_i32 = arith.constant 0 : i32
    %c0_i32_0 = arith.constant 0 : i32
    %c0_i32_1 = arith.constant 0 : i32
    return %c0_i32, %c0_i32_0 : i32, i32
  }
  func.func @transform_2(%arg0: i32, %arg1: i32) -> (i32, i32) {
    %c0_i32 = arith.constant 0 : i32
    %c0_i32_0 = arith.constant 0 : i32
    %c0_i32_1 = arith.constant 0 : i32
    return %c0_i32, %c0_i32_0 : i32, i32
  }
  func.func @transform_3(%arg0: i32, %arg1: i32) -> (i32, i32) {
    %c0_i32 = arith.constant 0 : i32
    %c0_i32_0 = arith.constant 0 : i32
    %c0_i32_1 = arith.constant 0 : i32
    return %c0_i32, %c0_i32_0 : i32, i32
  }
  func.func @transform_4(%arg0: i32, %arg1: i32) -> (i32, i32) {
    %c0_i32 = arith.constant 0 : i32
    %c0_i32_0 = arith.constant 0 : i32
    %c0_i32_1 = arith.constant 0 : i32
    return %c0_i32, %c0_i32_0 : i32, i32
  }
  func.func @transform_5(%arg0: i32, %arg1: i32) -> (i32, i32, i32, i32) {
    %c0_i32 = arith.constant 0 : i32
    %c0_i32_0 = arith.constant 0 : i32
    %c0_i32_1 = arith.constant 0 : i32
    return %arg0, %c0_i32, %arg1, %c0_i32_0 : i32, i32, i32, i32
  }
  func.func @transform_6(%arg0: i32, %arg1: i32) -> (i32, i32, i32, i32) {
    %c0_i32 = arith.constant 0 : i32
    %c0_i32_0 = arith.constant 0 : i32
    %c0_i32_1 = arith.constant 0 : i32
    return %arg0, %c0_i32, %arg1, %c0_i32_0 : i32, i32, i32, i32
  }
  func.func @transform_7(%arg0: i32, %arg1: i32) -> (i32, i32, i32, i32) {
    %c0_i32 = arith.constant 0 : i32
    %c0_i32_0 = arith.constant 0 : i32
    %c0_i32_1 = arith.constant 0 : i32
    return %arg0, %c0_i32, %arg1, %c0_i32_0 : i32, i32, i32, i32
  }
}

module attributes {stable_mosaic.version = 11 : i64} {
  func.func @attn_kernel(%arg0: i32, %arg1: i32, %arg2: i32, %arg3: memref<1x1x8x8xbf16, #tpu.memory_space<vmem>>, %arg4: memref<1x4x8x8xbf16, #tpu.memory_space<vmem>>, %arg5: memref<1x4x8x8xbf16, #tpu.memory_space<vmem>>, %arg6: memref<1x1x8x8xbf16, #tpu.memory_space<vmem>>, %arg7: memref<1x8x8xf32, #tpu.memory_space<vmem>>) attributes {dimension_semantics = [#tpu.dimension_semantics<parallel>, #tpu.dimension_semantics<parallel>, #tpu.dimension_semantics<arbitrary>], iteration_bounds = array<i64: 2, 1, 4>, scalar_prefetch = 0 : i64, scratch_operands = 0 : i64, tpu.core_type = #tpu.core_type<tc>, window_params = [{transform_indices = @transform_0, window_bounds = array<i64: 1, 1, 8, 8>}, {transform_indices = @transform_1, window_bounds = array<i64: 1, 4, 8, 8>}, {transform_indices = @transform_2, window_bounds = array<i64: 1, 4, 8, 8>}, {transform_indices = @transform_3, window_bounds = array<i64: 1, 1, 8, 8>}, {transform_indices = @transform_4, window_bounds = array<i64: 1, 8, 8>}]} {
    %c0 = arith.constant 0 : index
    %c0_0 = arith.constant 0 : index
    %c0_1 = arith.constant 0 : index
    %c0_2 = arith.constant 0 : index
    %0 = vector.load %arg3[%c0, %c0_0, %c0_1, %c0_2] : memref<1x1x8x8xbf16, #tpu.memory_space<vmem>>, vector<1x1x8x8xbf16>
    %1 = vector.shape_cast %0 : vector<1x1x8x8xbf16> to vector<8x8xbf16>
    %c0_3 = arith.constant 0 : index
    %2 = arith.index_cast %arg2 : i32 to index
    %c0_4 = arith.constant 0 : index
    %c0_5 = arith.constant 0 : index
    %3 = vector.load %arg4[%c0_3, %2, %c0_4, %c0_5] : memref<1x4x8x8xbf16, #tpu.memory_space<vmem>>, vector<1x1x8x8xbf16>
    %4 = vector.shape_cast %3 : vector<1x1x8x8xbf16> to vector<8x8xbf16>
    %c0_6 = arith.constant 0 : index
    %5 = arith.index_cast %arg2 : i32 to index
    %c0_7 = arith.constant 0 : index
    %c0_8 = arith.constant 0 : index
    %6 = vector.load %arg5[%c0_6, %5, %c0_7, %c0_8] : memref<1x4x8x8xbf16, #tpu.memory_space<vmem>>, vector<1x1x8x8xbf16>
    %7 = vector.shape_cast %6 : vector<1x1x8x8xbf16> to vector<8x8xbf16>
    %cst = arith.constant dense<0.000000e+00> : vector<8x8xf32>
    %8 = tpu.matmul %1, %4, %cst {dimension_numbers = #tpu.dot_dimension_numbers<[1], [1], [0], [0], [0, 0, 1, 0], [], []>} : vector<8x8xbf16>, vector<8x8xbf16>, vector<8x8xf32> -> vector<8x8xf32>
    %cst_9 = arith.constant dense<0xFF800000> : vector<8xf32>
    %9 = vector.multi_reduction <maximumf>, %8, %cst_9 [1] : vector<8x8xf32> to vector<8xf32>
    %10 = vector.shape_cast %9 : vector<8xf32> to vector<8x1xf32>
    %11 = vector.broadcast %10 : vector<8x1xf32> to vector<8x8xf32>
    %12 = arith.subf %8, %11 : vector<8x8xf32>
    %13 = math.exp %12 : vector<8x8xf32>
    %cst_10 = arith.constant dense<0.000000e+00> : vector<8xf32>
    %14 = vector.multi_reduction <add>, %13, %cst_10 [1] : vector<8x8xf32> to vector<8xf32>
    %15 = vector.shape_cast %14 : vector<8xf32> to vector<8x1xf32>
    %16 = tpu.reciprocal %15 {approx = true} : vector<8x1xf32> -> vector<8x1xf32>
    %17 = arith.truncf %13 : vector<8x8xf32> to vector<8x8xbf16>
    %cst_11 = arith.constant dense<0.000000e+00> : vector<8x8xf32>
    %18 = tpu.matmul %17, %7, %cst_11 {dimension_numbers = #tpu.dot_dimension_numbers<[1], [0], [0], [1], [0, 0, 1, 1], [], []>} : vector<8x8xbf16>, vector<8x8xbf16>, vector<8x8xf32> -> vector<8x8xf32>
    %19 = vector.broadcast %16 : vector<8x1xf32> to vector<8x8xf32>
    %20 = arith.mulf %18, %19 : vector<8x8xf32>
    %21 = arith.truncf %20 : vector<8x8xf32> to vector<8x8xbf16>
    %c0_12 = arith.constant 0 : index
    %c0_13 = arith.constant 0 : index
    %c0_14 = arith.constant 0 : index
    %c0_15 = arith.constant 0 : index
    %22 = vector.load %arg6[%c0_12, %c0_13, %c0_14, %c0_15] : memref<1x1x8x8xbf16, #tpu.memory_space<vmem>>, vector<1x1x8x8xbf16>
    %23 = vector.shape_cast %22 : vector<1x1x8x8xbf16> to vector<8x8xbf16>
    %24 = vector.shape_cast %21 : vector<8x8xbf16> to vector<1x1x8x8xbf16>
    tpu.vector_store %arg6[%c0_12, %c0_13, %c0_14, %c0_15], %24 {strides = array<i32>} : memref<1x1x8x8xbf16, #tpu.memory_space<vmem>>, vector<1x1x8x8xbf16>,
    %c0_i32 = arith.constant 0 : i32
    %25 = arith.cmpi eq, %arg2, %c0_i32 : i32
    %26 = arith.extui %25 : i1 to i32
    %c0_i32_16 = arith.constant 0 : i32
    %27 = arith.cmpi ne, %26, %c0_i32_16 : i32
    scf.if %27 {
      %cst_24 = arith.constant 0.000000e+00 : f32
      %38 = vector.broadcast %cst_24 : f32 to vector<1x8x8xf32>
      %c0_25 = arith.constant 0 : index
      %c0_26 = arith.constant 0 : index
      %c0_27 = arith.constant 0 : index
      %39 = vector.load %arg7[%c0_25, %c0_26, %c0_27] : memref<1x8x8xf32, #tpu.memory_space<vmem>>, vector<1x8x8xf32>
      tpu.vector_store %arg7[%c0_25, %c0_26, %c0_27], %38 {strides = array<i32>} : memref<1x8x8xf32, #tpu.memory_space<vmem>>, vector<1x8x8xf32>,
    } else {
    }
    %c0_17 = arith.constant 0 : index
    %c0_18 = arith.constant 0 : index
    %c0_19 = arith.constant 0 : index
    %28 = vector.load %arg7[%c0_17, %c0_18, %c0_19] : memref<1x8x8xf32, #tpu.memory_space<vmem>>, vector<1x8x8xf32>
    %29 = vector.shape_cast %28 : vector<1x8x8xf32> to vector<8x8xf32>
    %30 = vector.broadcast %16 : vector<8x1xf32> to vector<8x8xf32>
    %31 = arith.mulf %13, %30 : vector<8x8xf32>
    %cst_20 = arith.constant 2.500000e-01 : f32
    %32 = vector.broadcast %cst_20 : f32 to vector<8x8xf32>
    %33 = arith.mulf %31, %32 : vector<8x8xf32>
    %34 = arith.addf %29, %33 : vector<8x8xf32>
    %c0_21 = arith.constant 0 : index
    %c0_22 = arith.constant 0 : index
    %c0_23 = arith.constant 0 : index
    %35 = vector.load %arg7[%c0_21, %c0_22, %c0_23] : memref<1x8x8xf32, #tpu.memory_space<vmem>>, vector<1x8x8xf32>
    %36 = vector.shape_cast %35 : vector<1x8x8xf32> to vector<8x8xf32>
    %37 = vector.shape_cast %34 : vector<8x8xf32> to vector<1x8x8xf32>
    tpu.vector_store %arg7[%c0_21, %c0_22, %c0_23], %37 {strides = array<i32>} : memref<1x8x8xf32, #tpu.memory_space<vmem>>, vector<1x8x8xf32>,
    return
  }
  func.func @transform_0(%arg0: i32, %arg1: i32, %arg2: i32) -> (i32, i32, i32, i32) {
    %c0_i32 = arith.constant 0 : i32
    %c0_i32_0 = arith.constant 0 : i32
    return %arg0, %arg2, %arg1, %c0_i32 : i32, i32, i32, i32
  }
  func.func @transform_1(%arg0: i32, %arg1: i32, %arg2: i32) -> (i32, i32, i32, i32) {
    %c0_i32 = arith.constant 0 : i32
    %c0_i32_0 = arith.constant 0 : i32
    %c0_i32_1 = arith.constant 0 : i32
    %c0_i32_2 = arith.constant 0 : i32
    return %arg0, %c0_i32, %c0_i32_0, %c0_i32_1 : i32, i32, i32, i32
  }
  func.func @transform_2(%arg0: i32, %arg1: i32, %arg2: i32) -> (i32, i32, i32, i32) {
    %c0_i32 = arith.constant 0 : i32
    %c0_i32_0 = arith.constant 0 : i32
    %c0_i32_1 = arith.constant 0 : i32
    %c0_i32_2 = arith.constant 0 : i32
    return %arg0, %c0_i32, %c0_i32_0, %c0_i32_1 : i32, i32, i32, i32
  }
  func.func @transform_3(%arg0: i32, %arg1: i32, %arg2: i32) -> (i32, i32, i32, i32) {
    %c0_i32 = arith.constant 0 : i32
    %c0_i32_0 = arith.constant 0 : i32
    return %arg0, %arg2, %arg1, %c0_i32 : i32, i32, i32, i32
  }
  func.func @transform_4(%arg0: i32, %arg1: i32, %arg2: i32) -> (i32, i32, i32) {
    %c0_i32 = arith.constant 0 : i32
    %c0_i32_0 = arith.constant 0 : i32
    return %arg0, %arg1, %c0_i32 : i32, i32, i32
  }
}

module attributes {stable_mosaic.version = 11 : i64} {
  func.func @out_ffn_kernel(%arg0: i32, %arg1: i32, %arg2: memref<1x4x8x8xbf16, #tpu.memory_space<vmem>>, %arg3: memref<1x8x32xf32, #tpu.memory_space<vmem>>, %arg4: memref<32x32xbf16, #tpu.memory_space<vmem>>, %arg5: memref<1x32xf32, #tpu.memory_space<vmem>>, %arg6: memref<1x32xf32, #tpu.memory_space<vmem>>, %arg7: memref<1x32xf32, #tpu.memory_space<vmem>>, %arg8: memref<32x64xbf16, #tpu.memory_space<vmem>>, %arg9: memref<1x64xf32, #tpu.memory_space<vmem>>, %arg10: memref<64x32xbf16, #tpu.memory_space<vmem>>, %arg11: memref<1x32xf32, #tpu.memory_space<vmem>>, %arg12: memref<1x8x32xf32, #tpu.memory_space<vmem>>) attributes {dimension_semantics = [#tpu.dimension_semantics<parallel>, #tpu.dimension_semantics<parallel>], iteration_bounds = array<i64: 2, 1>, scalar_prefetch = 0 : i64, scratch_operands = 0 : i64, tpu.core_type = #tpu.core_type<tc>, window_params = [{transform_indices = @transform_0, window_bounds = array<i64: 1, 4, 8, 8>}, {transform_indices = @transform_1, window_bounds = array<i64: 1, 8, 32>}, {pipeline_mode = #tpu.pipeline_mode<synchronous>, transform_indices = @transform_2, window_bounds = array<i64: 32, 32>}, {pipeline_mode = #tpu.pipeline_mode<synchronous>, transform_indices = @transform_3, window_bounds = array<i64: 1, 32>}, {pipeline_mode = #tpu.pipeline_mode<synchronous>, transform_indices = @transform_4, window_bounds = array<i64: 1, 32>}, {pipeline_mode = #tpu.pipeline_mode<synchronous>, transform_indices = @transform_5, window_bounds = array<i64: 1, 32>}, {pipeline_mode = #tpu.pipeline_mode<synchronous>, transform_indices = @transform_6, window_bounds = array<i64: 32, 64>}, {pipeline_mode = #tpu.pipeline_mode<synchronous>, transform_indices = @transform_7, window_bounds = array<i64: 1, 64>}, {pipeline_mode = #tpu.pipeline_mode<synchronous>, transform_indices = @transform_8, window_bounds = array<i64: 64, 32>}, {pipeline_mode = #tpu.pipeline_mode<synchronous>, transform_indices = @transform_9, window_bounds = array<i64: 1, 32>}, {transform_indices = @transform_10, window_bounds = array<i64: 1, 8, 32>}]} {
    %c0 = arith.constant 0 : index
    %c0_0 = arith.constant 0 : index
    %c0_1 = arith.constant 0 : index
    %c0_2 = arith.constant 0 : index
    %0 = vector.load %arg2[%c0, %c0_0, %c0_1, %c0_2] : memref<1x4x8x8xbf16, #tpu.memory_space<vmem>>, vector<1x1x8x8xbf16>
    %1 = vector.shape_cast %0 : vector<1x1x8x8xbf16> to vector<8x8xbf16>
    %c0_3 = arith.constant 0 : index
    %c1 = arith.constant 1 : index
    %c0_4 = arith.constant 0 : index
    %c0_5 = arith.constant 0 : index
    %2 = vector.load %arg2[%c0_3, %c1, %c0_4, %c0_5] : memref<1x4x8x8xbf16, #tpu.memory_space<vmem>>, vector<1x1x8x8xbf16>
    %3 = vector.shape_cast %2 : vector<1x1x8x8xbf16> to vector<8x8xbf16>
    %c0_6 = arith.constant 0 : index
    %c2 = arith.constant 2 : index
    %c0_7 = arith.constant 0 : index
    %c0_8 = arith.constant 0 : index
    %4 = vector.load %arg2[%c0_6, %c2, %c0_7, %c0_8] : memref<1x4x8x8xbf16, #tpu.memory_space<vmem>>, vector<1x1x8x8xbf16>
    %5 = vector.shape_cast %4 : vector<1x1x8x8xbf16> to vector<8x8xbf16>
    %c0_9 = arith.constant 0 : index
    %c3 = arith.constant 3 : index
    %c0_10 = arith.constant 0 : index
    %c0_11 = arith.constant 0 : index
    %6 = vector.load %arg2[%c0_9, %c3, %c0_10, %c0_11] : memref<1x4x8x8xbf16, #tpu.memory_space<vmem>>, vector<1x1x8x8xbf16>
    %7 = vector.shape_cast %6 : vector<1x1x8x8xbf16> to vector<8x8xbf16>
    %8 = tpu.concatenate %1, %3, %5, %7 in 1 : vector<8x8xbf16>, vector<8x8xbf16>, vector<8x8xbf16>, vector<8x8xbf16> -> vector<8x32xbf16>
    %c0_12 = arith.constant 0 : index
    %c0_13 = arith.constant 0 : index
    %9 = vector.load %arg4[%c0_12, %c0_13] : memref<32x32xbf16, #tpu.memory_space<vmem>>, vector<32x32xbf16>
    %cst = arith.constant dense<0.000000e+00> : vector<8x32xf32>
    %10 = tpu.matmul %8, %9, %cst {dimension_numbers = #tpu.dot_dimension_numbers<[1], [0], [0], [1], [0, 0, 1, 1], [], []>} : vector<8x32xbf16>, vector<32x32xbf16>, vector<8x32xf32> -> vector<8x32xf32>
    %c0_14 = arith.constant 0 : index
    %c0_15 = arith.constant 0 : index
    %11 = vector.load %arg5[%c0_14, %c0_15] : memref<1x32xf32, #tpu.memory_space<vmem>>, vector<1x32xf32>
    %12 = vector.broadcast %11 : vector<1x32xf32> to vector<8x32xf32>
    %13 = arith.addf %10, %12 : vector<8x32xf32>
    %c0_16 = arith.constant 0 : index
    %c0_17 = arith.constant 0 : index
    %c0_18 = arith.constant 0 : index
    %14 = vector.load %arg3[%c0_16, %c0_17, %c0_18] : memref<1x8x32xf32, #tpu.memory_space<vmem>>, vector<1x8x32xf32>
    %15 = vector.shape_cast %14 : vector<1x8x32xf32> to vector<8x32xf32>
    %16 = arith.addf %13, %15 : vector<8x32xf32>
    %c0_19 = arith.constant 0 : index
    %c0_20 = arith.constant 0 : index
    %17 = vector.load %arg6[%c0_19, %c0_20] : memref<1x32xf32, #tpu.memory_space<vmem>>, vector<1x32xf32>
    %c0_21 = arith.constant 0 : index
    %c0_22 = arith.constant 0 : index
    %18 = vector.load %arg7[%c0_21, %c0_22] : memref<1x32xf32, #tpu.memory_space<vmem>>, vector<1x32xf32>
    %cst_23 = arith.constant dense<0.000000e+00> : vector<8xf32>
    %19 = vector.multi_reduction <add>, %16, %cst_23 [1] : vector<8x32xf32> to vector<8xf32>
    %20 = vector.shape_cast %19 : vector<8xf32> to vector<8x1xf32>
    %cst_24 = arith.constant 3.200000e+01 : f32
    %21 = vector.broadcast %cst_24 : f32 to vector<8x1xf32>
    %22 = arith.divf %20, %21 : vector<8x1xf32>
    %23 = vector.broadcast %22 : vector<8x1xf32> to vector<8x32xf32>
    %24 = arith.subf %16, %23 : vector<8x32xf32>
    %25 = arith.mulf %24, %24 : vector<8x32xf32>
    %cst_25 = arith.constant dense<0.000000e+00> : vector<8xf32>
    %26 = vector.multi_reduction <add>, %25, %cst_25 [1] : vector<8x32xf32> to vector<8xf32>
    %27 = vector.shape_cast %26 : vector<8xf32> to vector<8x1xf32>
    %cst_26 = arith.constant 3.200000e+01 : f32
    %28 = vector.broadcast %cst_26 : f32 to vector<8x1xf32>
    %29 = arith.divf %27, %28 : vector<8x1xf32>
    %cst_27 = arith.constant 9.99999974E-6 : f32
    %30 = vector.broadcast %cst_27 : f32 to vector<8x1xf32>
    %31 = arith.addf %29, %30 : vector<8x1xf32>
    %32 = math.rsqrt %31 : vector<8x1xf32>
    %33 = vector.broadcast %32 : vector<8x1xf32> to vector<8x32xf32>
    %34 = arith.mulf %24, %33 : vector<8x32xf32>
    %35 = vector.broadcast %17 : vector<1x32xf32> to vector<8x32xf32>
    %36 = arith.mulf %34, %35 : vector<8x32xf32>
    %37 = vector.broadcast %18 : vector<1x32xf32> to vector<8x32xf32>
    %38 = arith.addf %36, %37 : vector<8x32xf32>
    %39 = arith.truncf %38 : vector<8x32xf32> to vector<8x32xbf16>
    %c0_28 = arith.constant 0 : index
    %c0_29 = arith.constant 0 : index
    %40 = vector.load %arg8[%c0_28, %c0_29] : memref<32x64xbf16, #tpu.memory_space<vmem>>, vector<32x64xbf16>
    %cst_30 = arith.constant dense<0.000000e+00> : vector<8x64xf32>
    %41 = tpu.matmul %39, %40, %cst_30 {dimension_numbers = #tpu.dot_dimension_numbers<[1], [0], [0], [1], [0, 0, 1, 1], [], []>} : vector<8x32xbf16>, vector<32x64xbf16>, vector<8x64xf32> -> vector<8x64xf32>
    %c0_31 = arith.constant 0 : index
    %c0_32 = arith.constant 0 : index
    %42 = vector.load %arg9[%c0_31, %c0_32] : memref<1x64xf32, #tpu.memory_space<vmem>>, vector<1x64xf32>
    %43 = vector.broadcast %42 : vector<1x64xf32> to vector<8x64xf32>
    %44 = arith.addf %41, %43 : vector<8x64xf32>
    %cst_33 = arith.constant 0.707106769 : f32
    %45 = vector.broadcast %cst_33 : f32 to vector<8x64xf32>
    %46 = arith.mulf %44, %45 : vector<8x64xf32>
    %47 = math.absf %46 : vector<8x64xf32>
    %cst_34 = arith.constant 0.327591091 : f32
    %48 = vector.broadcast %cst_34 : f32 to vector<8x64xf32>
    %49 = arith.mulf %48, %47 : vector<8x64xf32>
    %cst_35 = arith.constant 1.000000e+00 : f32
    %50 = vector.broadcast %cst_35 : f32 to vector<8x64xf32>
    %51 = arith.addf %50, %49 : vector<8x64xf32>
    %cst_36 = arith.constant 1.000000e+00 : f32
    %52 = vector.broadcast %cst_36 : f32 to vector<8x64xf32>
    %53 = arith.divf %52, %51 : vector<8x64xf32>
    %cst_37 = arith.constant 1.06140542 : f32
    %54 = vector.broadcast %cst_37 : f32 to vector<8x64xf32>
    %55 = arith.mulf %53, %54 : vector<8x64xf32>
    %cst_38 = arith.constant -1.45315206 : f32
    %56 = vector.broadcast %cst_38 : f32 to vector<8x64xf32>
    %57 = arith.addf %56, %55 : vector<8x64xf32>
    %58 = arith.mulf %53, %57 : vector<8x64xf32>
    %cst_39 = arith.constant 1.42141378 : f32
    %59 = vector.broadcast %cst_39 : f32 to vector<8x64xf32>
    %60 = arith.addf %59, %58 : vector<8x64xf32>
    %61 = arith.mulf %53, %60 : vector<8x64xf32>
    %cst_40 = arith.constant -0.284496725 : f32
    %62 = vector.broadcast %cst_40 : f32 to vector<8x64xf32>
    %63 = arith.addf %62, %61 : vector<8x64xf32>
    %64 = arith.mulf %53, %63 : vector<8x64xf32>
    %cst_41 = arith.constant 0.254829586 : f32
    %65 = vector.broadcast %cst_41 : f32 to vector<8x64xf32>
    %66 = arith.addf %65, %64 : vector<8x64xf32>
    %67 = arith.mulf %53, %66 : vector<8x64xf32>
    %cst_42 = arith.constant 0.000000e+00 : f32
    %68 = vector.broadcast %cst_42 : f32 to vector<8x64xf32>
    %69 = arith.subf %68, %47 : vector<8x64xf32>
    %70 = arith.mulf %69, %47 : vector<8x64xf32>
    %71 = math.exp %70 : vector<8x64xf32>
    %72 = arith.mulf %67, %71 : vector<8x64xf32>
    %cst_43 = arith.constant 1.000000e+00 : f32
    %73 = vector.broadcast %cst_43 : f32 to vector<8x64xf32>
    %74 = arith.subf %73, %72 : vector<8x64xf32>
    %cst_44 = arith.constant 0.000000e+00 : f32
    %75 = vector.broadcast %cst_44 : f32 to vector<8x64xf32>
    %76 = arith.cmpf oge, %46, %75 : vector<8x64xf32>
    %cst_45 = arith.constant 0.000000e+00 : f32
    %77 = vector.broadcast %cst_45 : f32 to vector<8x64xf32>
    %78 = arith.subf %77, %74 : vector<8x64xf32>
    %79 = arith.select %76, %74, %78 : vector<8x64xi1>, vector<8x64xf32>
    %cst_46 = arith.constant 5.000000e-01 : f32
    %80 = vector.broadcast %cst_46 : f32 to vector<8x64xf32>
    %81 = arith.mulf %80, %44 : vector<8x64xf32>
    %cst_47 = arith.constant 1.000000e+00 : f32
    %82 = vector.broadcast %cst_47 : f32 to vector<8x64xf32>
    %83 = arith.addf %82, %79 : vector<8x64xf32>
    %84 = arith.mulf %81, %83 : vector<8x64xf32>
    %85 = arith.truncf %84 : vector<8x64xf32> to vector<8x64xbf16>
    %c0_48 = arith.constant 0 : index
    %c0_49 = arith.constant 0 : index
    %86 = vector.load %arg10[%c0_48, %c0_49] : memref<64x32xbf16, #tpu.memory_space<vmem>>, vector<64x32xbf16>
    %cst_50 = arith.constant dense<0.000000e+00> : vector<8x32xf32>
    %87 = tpu.matmul %85, %86, %cst_50 {dimension_numbers = #tpu.dot_dimension_numbers<[1], [0], [0], [1], [0, 0, 1, 1], [], []>} : vector<8x64xbf16>, vector<64x32xbf16>, vector<8x32xf32> -> vector<8x32xf32>
    %88 = arith.addf %16, %87 : vector<8x32xf32>
    %c0_51 = arith.constant 0 : index
    %c0_52 = arith.constant 0 : index
    %89 = vector.load %arg11[%c0_51, %c0_52] : memref<1x32xf32, #tpu.memory_space<vmem>>, vector<1x32xf32>
    %90 = vector.broadcast %89 : vector<1x32xf32> to vector<8x32xf32>
    %91 = arith.addf %88, %90 : vector<8x32xf32>
    %c0_53 = arith.constant 0 : index
    %c0_54 = arith.constant 0 : index
    %c0_55 = arith.constant 0 : index
    %92 = vector.load %arg12[%c0_53, %c0_54, %c0_55] : memref<1x8x32xf32, #tpu.memory_space<vmem>>, vector<1x8x32xf32>
    %93 = vector.shape_cast %92 : vector<1x8x32xf32> to vector<8x32xf32>
    %94 = vector.shape_cast %91 : vector<8x32xf32> to vector<1x8x32xf32>
    tpu.vector_store %arg12[%c0_53, %c0_54, %c0_55], %94 {strides = array<i32>} : memref<1x8x32xf32, #tpu.memory_space<vmem>>, vector<1x8x32xf32>,
    return
  }
  func.func @transform_0(%arg0: i32, %arg1: i32) -> (i32, i32, i32, i32) {
    %c0_i32 = arith.constant 0 : i32
    %c0_i32_0 = arith.constant 0 : i32
    %c0_i32_1 = arith.constant 0 : i32
    return %arg0, %c0_i32, %arg1, %c0_i32_0 : i32, i32, i32, i32
  }
  func.func @transform_1(%arg0: i32, %arg1: i32) -> (i32, i32, i32) {
    %c0_i32 = arith.constant 0 : i32
    %c0_i32_0 = arith.constant 0 : i32
    return %arg0, %arg1, %c0_i32 : i32, i32, i32
  }
  func.func @transform_2(%arg0: i32, %arg1: i32) -> (i32, i32) {
    %c0_i32 = arith.constant 0 : i32
    %c0_i32_0 = arith.constant 0 : i32
    %c0_i32_1 = arith.constant 0 : i32
    return %c0_i32, %c0_i32_0 : i32, i32
  }
  func.func @transform_3(%arg0: i32, %arg1: i32) -> (i32, i32) {
    %c0_i32 = arith.constant 0 : i32
    %c0_i32_0 = arith.constant 0 : i32
    %c0_i32_1 = arith.constant 0 : i32
    return %c0_i32, %c0_i32_0 : i32, i32
  }
  func.func @transform_4(%arg0: i32, %arg1: i32) -> (i32, i32) {
    %c0_i32 = arith.constant 0 : i32
    %c0_i32_0 = arith.constant 0 : i32
    %c0_i32_1 = arith.constant 0 : i32
    return %c0_i32, %c0_i32_0 : i32, i32
  }
  func.func @transform_5(%arg0: i32, %arg1: i32) -> (i32, i32) {
    %c0_i32 = arith.constant 0 : i32
    %c0_i32_0 = arith.constant 0 : i32
    %c0_i32_1 = arith.constant 0 : i32
    return %c0_i32, %c0_i32_0 : i32, i32
  }
  func.func @transform_6(%arg0: i32, %arg1: i32) -> (i32, i32) {
    %c0_i32 = arith.constant 0 : i32
    %c0_i32_0 = arith.constant 0 : i32
    %c0_i32_1 = arith.constant 0 : i32
    return %c0_i32, %c0_i32_0 : i32, i32
  }
  func.func @transform_7(%arg0: i32, %arg1: i32) -> (i32, i32) {
    %c0_i32 = arith.constant 0 : i32
    %c0_i32_0 = arith.constant 0 : i32
    %c0_i32_1 = arith.constant 0 : i32
    return %c0_i32, %c0_i32_0 : i32, i32
  }
  func.func @transform_8(%arg0: i32, %arg1: i32) -> (i32, i32) {
    %c0_i32 = arith.constant 0 : i32
    %c0_i32_0 = arith.constant 0 : i32
    %c0_i32_1 = arith.constant 0 : i32
    return %c0_i32, %c0_i32_0 : i32, i32
  }
  func.func @transform_9(%arg0: i32, %arg1: i32) -> (i32, i32) {
    %c0_i32 = arith.constant 0 : i32
    %c0_i32_0 = arith.constant 0 : i32
    %c0_i32_1 = arith.constant 0 : i32
    return %c0_i32, %c0_i32_0 : i32, i32
  }
  func.func @transform_10(%arg0: i32, %arg1: i32) -> (i32, i32, i32) {
    %c0_i32 = arith.constant 0 : i32
    %c0_i32_0 = arith.constant 0 : i32
    return %arg0, %arg1, %c0_i32 : i32, i32, i32
  }
}

</mosaic_0001>

<bundles_post_ra>
// kernel: mul.9
= control target key start
LH: loop header
LB: loop body
LE: loop exit
PB: predicated region body
PF: predicated region fallthrough
CT: control target
= control target key end

     0   :  { %s34_s0 = inlined_call_operand.vmem [shape: f32[1,96], index: 0, kind: input, shape index: {}]   ;;  %s35_s1 = inlined_call_operand.vmem [shape: f32[1,96], index: 1, kind: input, shape index: {}]   ;;  %s36_s2 = inlined_call_operand.vmem [shape: f32[1,96], index: 2, kind: output, shape index: {}]  }
   0x1   :  { %v3_v0 = vld [vmem:[%s34_s0] sm:$0x1] }
   0x2   :  { %v4_v1 = vld [vmem:[%s35_s1] sm:$0x1] }
   0x3   :  { %v7_v2 = vmul.f32 %v4_v1, %v3_v0 }
   0x5   :  { %9 = vst [vmem:[%s36_s2] sm:$0x1] %v7_v2 }

// kernel: transformer_layer.4
= control target key start
LH: loop header
LB: loop body
LE: loop exit
PB: predicated region body
PF: predicated region fallthrough
CT: control target
= control target key end

     0   :  { %10 = vsyncpa [#allocation3], 0  ;;  %s1032_s0 = inlined_call_operand.vmem [shape: bf16[2,4,8,8], index: 0, kind: input, shape index: {}]   ;;  %s1033_s1 = inlined_call_operand.vmem [shape: bf16[2,4,8,8], index: 1, kind: input, shape index: {}]   ;;  %s1034_s2 = inlined_call_operand.vmem [shape: bf16[2,4,8,8], index: 2, kind: input, shape index: {}]   ;;  %s1035_s3 = inlined_call_operand.vmem [shape: bf16[2,4,8,8], index: 3, kind: output, shape index: {0}]   ;;  %s1036_s4 = inlined_call_operand.hbm [shape: f32[2,8,8], index: 4, kind: output, shape index: {1}]  }
   0x1   :  { %12 = vsyncpa [#allocation3 + $0x1], 0  ;;  %s862_s15 = smov 0   ;;  %s864_s16 = smov 0  }
   0x2   :  { %s866_s17 = smov 0   ;;  %s868_s18 = smov 0  }
   0x3   :  { %s870_s19 = smov 0   ;;  %s872_s20 = smov 0  }
   0x4   :  { %s874_s21 = smov 0   ;;  %s876_s22 = smov 0  }
   0x5 LB: > { %s618_s23 = sadd.s32 4294967295, %s831_s22   ;;  %s619_s24 = sadd.s32 4294967294, %s831_s22   ;;  %s831_s22 = sphi %s876_s22, %s18_s22   ;;  %s827_s21 = sphi %s874_s21, %s1050_s21   ;;  %s823_s20 = sphi %s872_s20, %s1049_s20   ;;  %s819_s19 = sphi %s870_s19, %s1048_s19   ;;  %s815_s18 = sphi %s868_s18, %s1047_s18   ;;  %s811_s17 = sphi %s866_s17, %s1046_s17   ;;  %s807_s16 = sphi %s864_s16, %s1045_s16   ;;  %s803_s15 = sphi %s862_s15, %s1044_s15  }
   0x6   : > { %s30_s25 = sadd.s32 1, %s823_s20  ;;  %s37_s26 = sadd.s32 1, %s827_s21 }
   0x7   : > { %p31_p0 = scmp.ge.s32.totalorder %s30_s25, 4  ;;  %p168_p1 = scmp.ne.s32.totalorder %s811_s17, %s807_s16 }
   0x8   : > { %p169_p2 = scmp.eq.s32.totalorder %s618_s23, 7  ;;  %p174_p4 = scmp.ne.s32.totalorder %s807_s16, %s803_s15 }
   0x9   : > { %s1052_s25 = smov (%p31_p0, %s30_s25), 0  ;;  %s1054_s26 = smov (!%p31_p0, %s37_s26), %s827_s21 }
   0xa   : > { %p911_p3 = por %p169_p2, %p168_p1  ;;  %p39_p5 = scmp.ge.s32.totalorder %s1054_s26, 2 }
   0xb   : > { %p175_p6 = scmp.eq.s32.totalorder %s619_s24, 7  ;;  %p622_p7 = scmp.ge.s32.totalorder %s831_s22, 1 }
   0xc   : > { %p223_p8 = scmp.lt.s32.totalorder %s831_s22, 9  ;;  %s1056_s26 = smov (%p39_p5, %s1054_s26), 0 }
   0xd   : > { %1040 = sst [smem:[#allocation5_spill]] %s1056_s26  ;;  %p921_p9 = por %p175_p6, %p174_p4 }
   0xe   : > { %p224_p10 = pnand %p622_p7, %p223_p8  ;;  %s153_s29 = ssub.s32 %s827_s21, %s1056_s26 }
   0xf   : > { %s158_s30 = sadd.s32 1, %s811_s17  ;;  %p156_p11 = scmp.eq.s32.totalorder %s153_s29, 0  ;;  %v833_v0 = vmov (!%p224_p10), 0.0   ;;  %vm834_vm0 = vmmov (!%p224_p10), 0   ;;  %vm316_vm1 = vcmask (!%p224_p10), 64512   ;;  %vm377_vm2 = vcmask (!%p224_p10), 1043456  }
  0x10   : > { %227 = sbr.rel (%p224_p10) target bundleno = 651 (0x28b), region = 32  ;;  %s1037_s6 = sand.u32 (!%p224_p10), 1, %s807_s16   ;;  %647 = vmatprep.subr.bf16.mxu0 (!%p224_p10), %v833_v0  ;;  %649 = vmatprep.mubr.msk.bf16.mxu0 (!%p224_p10), %vm834_vm0, %v833_v0  ;;  %vm423_vm3 = vcmask (!%p224_p10), 60416  }
  0x11   : > { %s929_s5 = scalar_select %p156_p11, %s811_s17, %s158_s30  }
  0x12   : > { %p276_p12 = scmp.lt.s32.totalorder (!%p224_p10), %s819_s19, 1  ;;  %s935_s7 = sshll.u32 (!%p224_p10), %s1037_s6, 3  ;;  %653 = vmatprep.subr.bf16.mxu1 (!%p224_p10), %v833_v0  ;;  %655 = vmatprep.mubr.msk.bf16.mxu1 (!%p224_p10), %vm834_vm0, %v833_v0 }
  0x13   : > { %s632_s8 = sshll.u32 (!%p224_p10), %s815_s18, 2  ;;  %p278_p13 = scmp.lt.s32.totalorder (!%p224_p10), %s815_s18, 3 }
  0x14   : > { %p636_p0 = scmp.ne.s32.totalorder (!%p224_p10), %s815_s18, 0 }
  0x17   : > { %s277_s9 = scalar_select %p276_p12, %s819_s19, 1 }
  0x18   : > { %s279_s10 = scalar_select %p278_p13, %s815_s18, 3 }
  0x19   : > { %s641_s11 = sshll.u32 %s277_s9, 4  ;;  %s624_s12 = sshll.u32 %s277_s9, 2  ;;  %v835_v25 = vmov (!%p636_p0), 0.0  }
  0x1a   : > { %s291_s23 = scalar_lea.vmem %s1033_s1, %s641_s11  ;;  %s944_s24 = sadd.s32 %s624_s12, %s279_s10 }
  0x1b   : > { %s311_s29 = scalar_lea.vmem %s291_s23, %s632_s8  ;;  %s625_s30 = sshll.u32 %s944_s24, 2 }
  0x1c   : > { %v312_v1 = vld [vmem:[%s311_s29] sm:$0xf]  ;;  %s286_s26 = scalar_lea.vmem %s1032_s0, %s625_s30  ;;  %s296_s13 = scalar_lea.vmem %s1034_s2, %s641_s11 }
  0x1d   : > { %v321_v2 = vsel %vm316_vm1, %v312_v1, 0  ;;  %v309_v3 = vld [vmem:[%s286_s26] sm:$0xf]  ;;  %s314_s14 = scalar_lea.vmem %s296_s13, %s632_s8  ;;  %s307_s8 = scalar_lea.vmem %s1035_s3, %s625_s30 }
  0x1e   : > { %648 = vmatpush3.bf16.xpose.msra.mxu0 %v321_v2  ;;  %v315_v9 = vld [vmem:[%s314_s14] sm:$0xf]  ;;  %s275_s11 = scalar_lea.vmem [#allocation2], %s935_s7 }
  0x1f   : > { %v379_v10 = vsel %vm377_vm2, %v315_v9, 0  ;;  %429 = vst.msk [vmem:[%s275_s11] sm:$0xff] (!%p636_p0), %vm316_vm1, %v835_v25 }
  0x20   : > { %654 = vmatpush3.bf16.msra.mxu1 %v379_v10 }
  0x25   : > { %650 = vmatmul.mubr.msk.bf16.vlgmr.msra.gmra.mrb[0].mxu0 %vm316_vm1, %v309_v3 }
  0xf8   : > { %v357_v4 = vpop.f32.mrb[0].mxu0 }
  0xf9   : > { %v651_v5 = vpop.f32.mrb[1].mxu0  ;;  %v363_v6 = vsel %vm316_vm1, %v357_v4, -inf }
  0xfa   : > { %364 = vmax.xlane.f32.xlu0 %v363_v6  ;;  %v360_v7 = vpop.f32.mrb[2].mxu0 }
  0xfb   : > { %v652_v8 = vpop.f32.mrb[3].mxu0 }
 0x187   : > { %v365_v11 = vpop.xlane.xlu0 %364 }
 0x188   : > { %v366_v12 = vsub.f32 %v357_v4, %v365_v11 }
 0x18a   : > { %v367_v13 = vmul.f32 1.442695, %v366_v12 }
 0x18c   : > { %733 = vpow2.f32 %v367_v13 }
 0x196   : > { %v734_v14 = vpop.eup %733 }
 0x197   : > { %v369_v15 = vsel %vm316_vm1, %v734_v14, 0.0  ;;  %v373_v16 = vpack.c.bf16 %v734_v14, %v734_v14 }
 0x198   : > { %370 = vadd.xlane.f32.xlu0 %v369_v15 }
 0x199   : > { %656 = vmatmul.mubr.msk.bf16.vlgmr.msra.gmra.mrb[0].mxu1 %vm316_vm1, %v373_v16 }
 0x225   : > { %v371_v17 = vpop.xlane.xlu0 %370 }
 0x226   : > { %735 = vrcp.f32 %v371_v17 }
 0x230   : > { %v736_v18 = vpop.eup %735 }
 0x26b   : > { %428 = sbr.rel (%p636_p0) target bundleno = 626 (0x272), region = 36 }
 0x26c   : > { %v415_v19 = vpop.f32.mrb[0].mxu1 }
 0x26d   : > { %v421_v20 = vmul.f32 %v736_v18, %v415_v19  ;;  %v657_v21 = vpop.f32.mrb[1].mxu1 }
 0x26e   : > { %v418_v22 = vpop.f32.mrb[2].mxu1 }
 0x26f   : > { %v422_v23 = vpack.c.bf16 %v421_v20, %v421_v20  ;;  %v658_v24 = vpop.f32.mrb[3].mxu1 }
 0x271   : > { %424 = vst.msk [vmem:[%s307_s8] sm:$0xf] %vm423_vm3, %v422_v23 }
 0x272 PF: > { %v431_v26 = vmul.f32 %v736_v18, %v734_v14  ;;  %v430_v27 = vld [vmem:[%s275_s11] sm:$0xff]  ;;  %s638_s23 = sshll.u32 %s819_s19, 7  ;;  %s464_s24 = sshll.u32 %s275_s11, 4  ;;  %s978_s24 = int_to_ptr.vmem [resolvable:$true] %s464_s24 }
 0x273   : > { %s976_s7 = scalar_lea.hbm %s1036_s4, %s638_s23  ;;  %s1042_s18 = sand.u32 1, %s807_s16  }
 0x274   : > { %v432_v28 = vmul.f32 0.25, %v431_v26  ;;  %s447_s9 = scalar_lea.sflag [#allocation3], %s1042_s18  ;;  %s737_s10 = scalar_lea.vmem %s978_s24, 128 }
 0x275   : > { %p738_p1 = scmp.ne.s32.totalorder %s978_s24, %s737_s10  ;;  %s836_s19 = smov [#allocation2]  }
 0x276   : > { %v433_v29 = vadd.f32 %v432_v28, %v430_v27  ;;  %s741_s12 = sshll.u32 %s836_s19, 4  ;;  %s742_s12 = int_to_ptr.vmem [resolvable:$false] %s741_s12 }
 0x277   : > { %p739_p2 = pnand %p738_p1, %p911_p3  ;;  %s743_s13 = scalar_lea.vmem %s742_s12, 256 }
 0x278   : > { %434 = vst.msk [vmem:[%s275_s11] sm:$0xff] %vm316_vm1, %v433_v29  ;;  %p744_p5 = scmp.lt.s32.totalorder %s978_s24, %s742_s12  ;;  %p745_p6 = scmp.lt.s32.totalorder %s743_s13, %s737_s10 }
 0x279   : > { %p740_p4 = pneg %p739_p2 }
 0x27a   : > { %p746_p7 = por %p745_p6, %p744_p5 }
 0x27c   : > { %p747_p8 = pnand %p746_p7, %p740_p4 }
 0x27e   : > { %750 = shalt.err (!%p747_p8)
}
 0x27f   : > { %s751_s14 = scalar_lea.hbm %s976_s7, 128  ;;  %s755_s8 = scalar_lea.hbm %s1036_s4, 256 }
 0x280   : > { %p752_p10 = scmp.ne.s32.totalorder %s976_s7, %s751_s14  ;;  %p756_p13 = scmp.lt.u32.totalorder %s976_s7, %s1036_s4 }
 0x281   : > { %p757_p0 = scmp.lt.u32.totalorder %s755_s8, %s751_s14  ;;  %p759_p2 = scmp.lt.u32.totalorder %s751_s14, %s976_s7 }
 0x282   : > { %p753_p11 = pnand %p752_p10, %p911_p3 }
 0x283   : > { %p758_p1 = por %p757_p0, %p756_p13 }
 0x284   : > { %p754_p12 = pneg %p753_p11 }
 0x285   : > { %p760_p4 = por %p759_p2, %p758_p1 }
 0x287   : > { %p761_p5 = pnand %p760_p4, %p754_p12 }
 0x289   : > { %764 = shalt.err (!%p761_p5)
}
 0x28a   : > { %659 = dma.vmem_to_hbm [thread:$0]  (%p911_p3), %s978_s24, 128, %s976_s7, %s447_s9  }
 0x28b PF: > { %p665_p6 = scmp.ge.s32.totalorder %s831_s22, 2  ;;  %s490_s29 = sand.u32 1, %s803_s15  }
 0x28c   : > { %s491_s30 = scalar_lea.sflag [#allocation3], %s490_s29 }
 0x28d   : > { %p662_p7 = pnand %p665_p6, %p921_p9 }
 0x28f   : > { %798 = dma.done.wait (!%p662_p7), %s491_s30, 128  }
 0x290   : > { %800 = vsyncadd (!%p662_p7), %s491_s30, 4294967168  ;;  %s18_s22 = sadd.s32 1, %s831_s22   ;;  %s1043_s27 = sld [smem:[#allocation5_spill]] }
 0x291   : > { %p15_p8 = scmp.ge.s32.totalorder %s18_s22, 10   ;;  %s1044_s15 = smov %s807_s16 }
 0x292   : > { %s1045_s16 = smov %s811_s17  ;;  %s1046_s17 = smov %s929_s5 }
 0x293   : > { %s1047_s18 = smov %s823_s20  ;;  %s1048_s19 = smov %s827_s21 }
 0x294   : > { %s1049_s20 = smov %s1052_s25  ;;  %17 = sbr.rel (!%p15_p8) target bundleno = 5 (0x5), region = 91 }
 0x296   : > { %s1050_s21 = smov %s1043_s27 }
 0x29b   :  { %496 = vsyncpa [#allocation3], 1 }
 0x29c   :  { %498 = vsyncpa [#allocation3 + $0x1], 1 }

// kernel: transformer_layer.3
= control target key start
LH: loop header
LB: loop body
LE: loop exit
PB: predicated region body
PF: predicated region fallthrough
CT: control target
= control target key end

     0   :  { %s844_s24 = smov 0   ;;  %s846_s25 = smov 0   ;;  %s928_s0 = inlined_call_operand.vmem [shape: f32[2,8,32], index: 0, kind: input, shape index: {}]   ;;  %s929_s1 = inlined_call_operand.vmem [shape: f32[1,32], index: 1, kind: input, shape index: {}]   ;;  %s930_s2 = inlined_call_operand.vmem [shape: f32[1,32], index: 2, kind: input, shape index: {}]   ;;  %s931_s3 = inlined_call_operand.vmem [shape: bf16[32,96], index: 3, kind: input, shape index: {}]   ;;  %s932_s4 = inlined_call_operand.vmem [shape: f32[1,96], index: 4, kind: input, shape index: {}]   ;;  %s933_s5 = inlined_call_operand.vmem [shape: bf16[2,4,8,8], index: 5, kind: output, shape index: {0}]   ;;  %s934_s6 = inlined_call_operand.vmem [shape: bf16[2,4,8,8], index: 6, kind: output, shape index: {1}]   ;;  %s935_s7 = inlined_call_operand.vmem [shape: bf16[2,4,8,8], index: 7, kind: output, shape index: {2}]  }
   0x1   :  { %s848_s26 = smov 0  }
   0x2 LB: > { %s30_s27 = sadd.s32 1, %s785_s25  ;;  %p685_p0 = scmp.ge.s32.totalorder %s789_s26, 1  ;;  %s789_s26 = sphi %s848_s26, %s18_s26   ;;  %s785_s25 = sphi %s846_s25, %s937_s25   ;;  %s781_s24 = sphi %s844_s24, %s936_s24  }
   0x3   : > { %p32_p1 = scmp.ge.s32.totalorder %s30_s27, 2  ;;  %p264_p2 = scmp.lt.s32.totalorder %s789_s26, 3 }
   0x5   : > { %s939_s27 = smov (%p32_p1, %s30_s27), 0  ;;  %p265_p3 = pnand %p685_p0, %p264_p2 }
   0x6   : > { %p317_p4 = scmp.lt.s32.totalorder (!%p265_p3), %s781_s24, 1  ;;  %vm352_vm0 = vcmask (!%p265_p3), 261120   ;;  %v763_v7 = vld [vmem:[%s931_s3] sm:$0xff] (!%p265_p3)   ;;  %v791_v8 = vmov (!%p265_p3), 0.0   ;;  %vm792_vm1 = vmmov (!%p265_p3), 0   ;;  %v764_v9 = vld [vmem:[%s931_s3 + $0x8] sm:$0xff] (!%p265_p3)  }
   0x7   : > { %268 = sbr.rel (%p265_p3) target bundleno = 697 (0x2b9), region = 40  ;;  %718 = vmatprep.subr.bf16.mxu0 (!%p265_p3), %v791_v8  ;;  %722 = vmatprep.mubr.msk.bf16.mxu0 (!%p265_p3), %vm792_vm1, %v791_v8  ;;  %v693_v14 = vld [vmem:[%s929_s1] ss:$0 sm:$0xff] (!%p265_p3)  ;;  %vm449_vm2 = vcmask (!%p265_p3), 60416   ;;  %s793_s23 = smov (!%p265_p3), 120  }
   0x8   : > { %719 = vmatpush3.bf16.msra.mxu0 (!%p265_p3), %v763_v7  ;;  %v694_v16 = vld [vmem:[%s930_s2] ss:$0 sm:$0xff] (!%p265_p3)  ;;  %s796_s29 = smov (!%p265_p3), 64   ;;  %s797_s30 = smov (!%p265_p3), 88  }
   0x9   : > { %720 = vmatprep.subr.bf16.mxu0 (!%p265_p3), %v791_v8  ;;  %v695_v20 = vld [vmem:[%s932_s4] ss:$0 sm:$0xff] (!%p265_p3)  ;;  %s799_s9 = smov (!%p265_p3), 112   ;;  %s800_s10 = smov (!%p265_p3), 80  }
   0xa   : > { %s801_s11 = smov (!%p265_p3), 48   ;;  %s802_s12 = smov (!%p265_p3), 104  }
   0xb   : > { %s803_s13 = smov (!%p265_p3), 40  }
   0xc   : > { %721 = vmatpush3.bf16.msra.mxu0 (!%p265_p3), %v764_v9 }
   0xe   : > { %s941_s24 = smov (!%p317_p4, %s781_s24), 1 }
   0xf   : > { %s686_s28 = sshll.u32 %s941_s24, 3  ;;  %s887_s19 = sshll.u32 %s941_s24, 4 }
  0x10   : > { %s323_s8 = scalar_lea.vmem %s928_s0, %s686_s28  ;;  %s893_s22 = scalar_lea.vmem %s933_s5, %s887_s19 }
  0x11   : > { %v349_v0 = vld [vmem:[%s323_s8] sm:$0xff]  ;;  %s794_s28 = smov 96   ;;  %s795_s24 = smov 72  }
  0x12   : > { %v353_v1 = vsel %vm352_vm0, %v349_v0, 0.0  ;;  %s798_s8 = smov 56   ;;  %s339_s16 = scalar_lea.vmem %s934_s6, %s887_s19 }
  0x13   : > { %354 = vadd.xlane.f32.xlu0 %v353_v1  ;;  %s347_s20 = scalar_lea.vmem %s935_s7, %s887_s19 }
  0xa0   : > { %v355_v2 = vpop.xlane.xlu0 %354 }
  0xa1   : > { %v357_v3 = vmul.f32 0.03125, %v355_v2 }
  0xa3   : > { %v358_v4 = vsub.f32 %v349_v0, %v357_v3 }
  0xa5   : > { %v359_v5 = vmul.f32 %v358_v4, %v358_v4 }
  0xa7   : > { %v360_v6 = vsel %vm352_vm0, %v359_v5, 0.0 }
  0xa8   : > { %361 = vadd.xlane.f32.xlu0 %v360_v6 }
 0x135   : > { %v362_v10 = vpop.xlane.xlu0 %361 }
 0x136   : > { %v363_v11 = vmul.f32 0.03125, %v362_v10 }
 0x138   : > { %v364_v12 = vadd.f32 1e-05, %v363_v11 }
 0x13a   : > { %765 = vrsqrt.f32 %v364_v12 }
 0x144   : > { %v766_v13 = vpop.eup %765 }
 0x145   : > { %v366_v15 = vmul.f32 %v766_v13, %v358_v4 }
 0x147   : > { %v373_v17 = vmul.f32 %v693_v14, %v366_v15 }
 0x149   : > { %v380_v18 = vadd.f32 %v694_v16, %v373_v17 }
 0x14b   : > { %v381_v19 = vpack.c.bf16 %v380_v18, %v380_v18 }
 0x14d   : > { %723 = vmatmul.mubr.msk.bf16.vlgmr.msra.gmra.mrb[0].mxu0 %vm352_vm0, %v381_v19 }
 0x220   : > { %v442_v21 = vpop.f32.mrb[0].mxu0 }
 0x221   : > { %v443_v22 = vadd.f32 %v695_v20, %v442_v21  ;;  %v724_v23 = vpop.f32.mrb[1].mxu0 }
 0x222   : > { %v445_v24 = vpop.f32.mrb[2].mxu0 }
 0x223   : > { %v448_v25 = vpack.c.bf16 %v443_v22, %v443_v22  ;;  %v725_v26 = vpop.f32.mrb[3].mxu0 }
 0x225   : > { %462 = vrot.lane.b32.xlu0 %v448_v25, %s793_s23  ;;  %454 = vrot.lane.b32.xlu1 %v448_v25, %s794_s28  ;;  %450 = vst.msk [vmem:[%s893_s22] sm:$0xf] %vm449_vm2, %v448_v25 }
 0x229   : > { %497 = vrot.lane.b32.xlu0 %v448_v25, %s795_s24  ;;  %458 = vrot.lane.b32.xlu1 %v448_v25, %s796_s29 }
 0x22d   : > { %467 = vrot.lane.b32.xlu1 %v448_v25, %s797_s30 }
 0x231   : > { %472 = vrot.lane.b32.xlu1 %v448_v25, %s798_s8 }
 0x235   : > { %477 = vrot.lane.b32.xlu1 %v448_v25, %s799_s9 }
 0x239   : > { %482 = vrot.lane.b32.xlu1 %v448_v25, %s800_s10 }
 0x23d   : > { %487 = vrot.lane.b32.xlu1 %v448_v25, %s801_s11 }
 0x241   : > { %492 = vrot.lane.b32.xlu1 %v448_v25, %s802_s12 }
 0x245   : > { %502 = vrot.lane.b32.xlu1 %v448_v25, %s803_s13 }
 0x297   : > { %v463_v27 = vpop.permute.xlu0 %462  ;;  %v455_v28 = vpop.permute.xlu1 %454 }
 0x298   : > { %700 = vst.msk [vmem:[%s893_s22 + $0x4] sm:$0xf] %vm449_vm2, %v463_v27  ;;  %457 = vst.msk [vmem:[%s339_s16] sm:$0xf] %vm449_vm2, %v455_v28 }
 0x29b   : > { %v498_v29 = vpop.permute.xlu0 %497  ;;  %v459_v30 = vpop.permute.xlu1 %458 }
 0x29c   : > { %707 = vst.msk [vmem:[%s339_s16 + $0xc] sm:$0xf] %vm449_vm2, %v498_v29  ;;  %461 = vst.msk [vmem:[%s347_s20] sm:$0xf] %vm449_vm2, %v459_v30 }
 0x29f   : > { %v468_v31 = vpop.permute.xlu1 %467 }
 0x2a0   : > { %701 = vst.msk [vmem:[%s339_s16 + $0x4] sm:$0xf] %vm449_vm2, %v468_v31 }
 0x2a3   : > { %v473_v32 = vpop.permute.xlu1 %472 }
 0x2a4   : > { %702 = vst.msk [vmem:[%s347_s20 + $0x4] sm:$0xf] %vm449_vm2, %v473_v32 }
 0x2a7   : > { %v478_v33 = vpop.permute.xlu1 %477 }
 0x2a8   : > { %703 = vst.msk [vmem:[%s893_s22 + $0x8] sm:$0xf] %vm449_vm2, %v478_v33 }
 0x2ab   : > { %v483_v34 = vpop.permute.xlu1 %482 }
 0x2ac   : > { %704 = vst.msk [vmem:[%s339_s16 + $0x8] sm:$0xf] %vm449_vm2, %v483_v34 }
 0x2af   : > { %v488_v35 = vpop.permute.xlu1 %487 }
 0x2b0   : > { %705 = vst.msk [vmem:[%s347_s20 + $0x8] sm:$0xf] %vm449_vm2, %v488_v35 }
 0x2b3   : > { %v493_v36 = vpop.permute.xlu1 %492 }
 0x2b4   : > { %706 = vst.msk [vmem:[%s893_s22 + $0xc] sm:$0xf] %vm449_vm2, %v493_v36 }
 0x2b7   : > { %v503_v37 = vpop.permute.xlu1 %502 }
 0x2b8   : > { %708 = vst.msk [vmem:[%s347_s20 + $0xc] sm:$0xf] %vm449_vm2, %v503_v37 }
 0x2b9 PF: > { %s18_s26 = sadd.s32 1, %s789_s26   ;;  %s936_s24 = smov %s785_s25 }
 0x2ba   : > { %p15_p5 = scmp.ge.s32.totalorder %s18_s26, 4   ;;  %s937_s25 = smov %s939_s27 }
 0x2bc   :  { %17 = sbr.rel (!%p15_p5) target bundleno = 2 (0x2), region = 103 }

// kernel: transformer_layer.5
= control target key start
LH: loop header
LB: loop body
LE: loop exit
PB: predicated region body
PF: predicated region fallthrough
CT: control target
= control target key end

     0   :  { %s1024_s13 = smov 0   ;;  %s1026_s14 = smov 0   ;;  %s1131_s0 = inlined_call_operand.vmem [shape: bf16[2,4,8,8], index: 0, kind: input, shape index: {}]   ;;  %s1132_s1 = inlined_call_operand.vmem [shape: f32[2,8,32], index: 1, kind: input, shape index: {}]   ;;  %s1133_s2 = inlined_call_operand.vmem [shape: bf16[32,32], index: 2, kind: input, shape index: {}]   ;;  %s1134_s3 = inlined_call_operand.vmem [shape: f32[1,32], index: 3, kind: input, shape index: {}]   ;;  %s1135_s4 = inlined_call_operand.vmem [shape: f32[1,32], index: 4, kind: input, shape index: {}]   ;;  %s1136_s5 = inlined_call_operand.vmem [shape: f32[1,32], index: 5, kind: input, shape index: {}]   ;;  %s1137_s6 = inlined_call_operand.vmem [shape: bf16[32,64], index: 6, kind: input, shape index: {}]   ;;  %s1138_s7 = inlined_call_operand.vmem [shape: f32[1,64], index: 7, kind: input, shape index: {}]   ;;  %s1139_s8 = inlined_call_operand.vmem [shape: bf16[64,32], index: 8, kind: input, shape index: {}]   ;;  %s1140_s9 = inlined_call_operand.vmem [shape: f32[1,32], index: 9, kind: input, shape index: {}]   ;;  %s1141_s10 = inlined_call_operand.vmem [shape: f32[2,8,32], index: 10, kind: output, shape index: {}]  }
   0x1   :  { %s1028_s15 = smov 0  }
   0x2 LB: > { %s32_s16 = sadd.s32 1, %s958_s14  ;;  %p825_p0 = scmp.ge.s32.totalorder %s962_s15, 1  ;;  %s962_s15 = sphi %s1028_s15, %s20_s15   ;;  %s958_s14 = sphi %s1026_s14, %s1143_s14   ;;  %s954_s13 = sphi %s1024_s13, %s1142_s13  }
   0x3   : > { %p34_p1 = scmp.ge.s32.totalorder %s32_s16, 2  ;;  %p345_p2 = scmp.lt.s32.totalorder %s962_s15, 3 }
   0x5   : > { %s1145_s16 = smov (%p34_p1, %s32_s16), 0  ;;  %p346_p3 = pnand %p825_p0, %p345_p2 }
   0x6   : > { %p395_p4 = scmp.lt.s32.totalorder (!%p346_p3), %s954_s13, 1  ;;  %v926_v0 = vld [vmem:[%s1133_s2] sm:$0xff] (!%p346_p3)   ;;  %v964_v1 = vmov (!%p346_p3), 0.0   ;;  %v927_v2 = vld [vmem:[%s1133_s2 + $0x8] sm:$0xff] (!%p346_p3)   ;;  %vm965_vm0 = vmmov (!%p346_p3), 0   ;;  %s966_s25 = smov (!%p346_p3), 8  }
   0x7   : > { %349 = sbr.rel (%p346_p3) target bundleno = 1151 (0x47f), region = 60  ;;  %866 = vmatprep.subr.bf16.mxu1 (!%p346_p3), %v964_v1  ;;  %882 = vmatprep.subr.bf16.mxu0 (!%p346_p3), %v964_v1  ;;  %s967_s26 = smov (!%p346_p3), 24   ;;  %vm440_vm1 = vcmask (!%p346_p3), 64512   ;;  %vm444_vm2 = vcmask (!%p346_p3), 130048   ;;  %vm447_vm3 = vcmask (!%p346_p3), 195584   ;;  %vm473_vm4 = vcmask (!%p346_p3), 261120  }
   0x8   : > { %867 = vmatpush3.bf16.msra.mxu1 (!%p346_p3), %v926_v0  ;;  %870 = vmatprep.mubr.msk.bf16.mxu1 (!%p346_p3), %vm965_vm0, %v964_v1  ;;  %s968_s27 = smov (!%p346_p3), 16   ;;  %v836_v13 = vld [vmem:[%s1134_s3] ss:$0 sm:$0xff] (!%p346_p3)  ;;  %v929_v28 = vld [vmem:[%s1137_s6 + $0x8] sm:$0xff] (!%p346_p3)   ;;  %v932_v41 = vld [vmem:[%s1139_s8 + $0x10] sm:$0xff] (!%p346_p3)   ;;  %vm675_vm6 = vcmask (!%p346_p3), 523264  }
   0x9   : > { %868 = vmatprep.subr.bf16.mxu1 (!%p346_p3), %v964_v1  ;;  %890 = vmatprep.mubr.msk.bf16.mxu0 (!%p346_p3), %vm965_vm0, %v964_v1  ;;  %v928_v27 = vld [vmem:[%s1137_s6] sm:$0xff] (!%p346_p3)   ;;  %v931_v40 = vld [vmem:[%s1139_s8 + $0x8] sm:$0xff] (!%p346_p3)   ;;  %v933_v42 = vld [vmem:[%s1139_s8 + $0x18] sm:$0xff] (!%p346_p3)  }
   0xa   : > { %v840_v33 = vld [vmem:[%s1135_s4] ss:$0 sm:$0xff] (!%p346_p3) }
   0xb   : > { %v841_v35 = vld [vmem:[%s1136_s5] ss:$0 sm:$0xff] (!%p346_p3) }
   0xc   : > { %869 = vmatpush3.bf16.msra.mxu1 (!%p346_p3), %v927_v2  ;;  %v930_v39 = vld [vmem:[%s1139_s8] sm:$0xff] (!%p346_p3)  }
   0xd   : > { %874 = vmatprep.subr.bf16.mxu1 (!%p346_p3), %v964_v1  ;;  %883 = vmatpush3.bf16.msra.mxu0 (!%p346_p3), %v930_v39  ;;  %v842_v43 = vld [vmem:[%s1138_s7] ss:$0 sm:$0xff] (!%p346_p3) }
   0xe   : > { %s1147_s13 = smov (!%p395_p4, %s954_s13), 1  ;;  %884 = vmatprep.subr.bf16.mxu0 %v964_v1 }
   0xf   : > { %s854_s21 = sshll.u32 %s1147_s13, 4  ;;  %s828_s28 = sshll.u32 %s1147_s13, 3 }
  0x10   : > { %s402_s24 = scalar_lea.vmem %s1131_s0, %s854_s21  ;;  %s409_s11 = scalar_lea.vmem %s1132_s1, %s828_s28 }
  0x11   : > { %v923_v3 = vld [vmem:[%s402_s24 + $0x4] ss:$0 sps:$4 sm:$0xff]   ;;  %v925_v4 = vld [vmem:[%s402_s24 + $0xc] ss:$0 sps:$4 sm:$0xff]   ;;  %v924_v5 = vld [vmem:[%s402_s24 + $0x8] ss:$0 sps:$4 sm:$0xff]   ;;  %885 = vmatpush3.bf16.msra.mxu0 %v931_v40 }
  0x12   : > { %428 = vrot.lane.b32.xlu0 %v923_v3, %s966_s25  ;;  %438 = vrot.lane.b32.xlu1 %v925_v4, %s967_s26  ;;  %v418_v7 = vld [vmem:[%s402_s24] sm:$0xf]  ;;  %s416_s25 = scalar_lea.vmem %s1141_s10, %s828_s28 }
  0x13   : > { %v516_v15 = vld [vmem:[%s409_s11] sm:$0xff]  ;;  %886 = vmatprep.subr.bf16.mxu0 %v964_v1 }
  0x15   : > { %887 = vmatpush3.bf16.msra.mxu0 %v932_v41 }
  0x16   : > { %433 = vrot.lane.b32.xlu0 %v924_v5, %s968_s27  ;;  %888 = vmatprep.subr.bf16.mxu0 %v964_v1 }
  0x19   : > { %889 = vmatpush3.bf16.msra.mxu0 %v933_v42 }
  0x84   : > { %v429_v6 = vpop.permute.xlu0 %428  ;;  %v439_v8 = vpop.permute.xlu1 %438 }
  0x85   : > { %v443_v9 = vsel %vm440_vm1, %v418_v7, %v429_v6 }
  0x88   : > { %v434_v10 = vpop.permute.xlu0 %433 }
  0x89   : > { %v446_v11 = vsel %vm444_vm2, %v443_v9, %v434_v10 }
  0x8a   : > { %v449_v12 = vsel %vm447_vm3, %v446_v11, %v439_v8 }
  0x8b   : > { %871 = vmatmul.mubr.msk.bf16.vlgmr.msra.gmra.mrb[0].mxu1 %vm473_vm4, %v449_v12  ;;  %v851_v12 = vld [vmem:[%s1140_s9] ss:$0 sm:$0xff] }
  0x8c   : > { %878 = vmatprep.mubr.msk.bf16.mxu1 %vm965_vm0, %v964_v1  ;;  %875 = vmatpush3.bf16.msra.mxu1 %v928_v27 }
  0x8d   : > { %876 = vmatprep.subr.bf16.mxu1 %v964_v1 }
  0x90   : > { %877 = vmatpush3.bf16.msra.mxu1 %v929_v28 }
 0x15e   : > { %v510_v14 = vpop.f32.mrb[0].mxu1 }
 0x15f   : > { %v511_v16 = vadd.f32 %v836_v13, %v510_v14  ;;  %v872_v17 = vpop.f32.mrb[1].mxu1 }
 0x160   : > { %v513_v18 = vpop.f32.mrb[2].mxu1 }
 0x161   : > { %v1074_v19 = vadd.f32 %v516_v15, %v511_v16  ;;  %v873_v20 = vpop.f32.mrb[3].mxu1 }
 0x163   : > { %v520_v21 = vsel %vm473_vm4, %v1074_v19, 0.0 }
 0x164   : > { %521 = vadd.xlane.f32.xlu1 %v520_v21 }
 0x1f1   : > { %v522_v22 = vpop.xlane.xlu1 %521 }
 0x1f2   : > { %v524_v23 = vmul.f32 0.03125, %v522_v22 }
 0x1f4   : > { %v525_v24 = vsub.f32 %v1074_v19, %v524_v23 }
 0x1f6   : > { %v526_v25 = vmul.f32 %v525_v24, %v525_v24 }
 0x1f8   : > { %v527_v26 = vsel %vm473_vm4, %v526_v25, 0.0 }
 0x1f9   : > { %528 = vadd.xlane.f32.xlu0 %v527_v26 }
 0x286   : > { %v529_v29 = vpop.xlane.xlu0 %528 }
 0x287   : > { %v530_v30 = vmul.f32 0.03125, %v529_v29 }
 0x289   : > { %v531_v31 = vadd.f32 1e-05, %v530_v30 }
 0x28b   : > { %934 = vrsqrt.f32 %v531_v31 }
 0x295   : > { %v935_v32 = vpop.eup %934 }
 0x296   : > { %v533_v34 = vmul.f32 %v935_v32, %v525_v24 }
 0x298   : > { %v540_v36 = vmul.f32 %v840_v33, %v533_v34 }
 0x29a   : > { %v547_v37 = vadd.f32 %v841_v35, %v540_v36 }
 0x29c   : > { %v548_v38 = vpack.c.bf16 %v547_v37, %v547_v37 }
 0x29e   : > { %879 = vmatmul.mubr.msk.bf16.vlgmr.msra.gmra.mrb[4].mxu1 %vm473_vm4, %v548_v38 }
 0x371   : > { %v609_v44 = vpop.f32.mrb[4].mxu1 }
 0x372   : > { %v610_v45 = vadd.f32 %v842_v43, %v609_v44  ;;  %v880_v46 = vpop.f32.mrb[5].mxu1 }
 0x373   : > { %v612_v47 = vpop.f32.mrb[6].mxu1 }
 0x374   : > { %v615_v48 = vmul.f32 0.70710677, %v610_v45  ;;  %v881_v49 = vpop.f32.mrb[7].mxu1  ;;  %v639_v7 = vmul.f32 0.5, %v610_v45 }
 0x376   : > { %v616_v50 = vand.u32 2147483647, %v615_v48  ;;  %vm636_vm5 = vcmp.ge.f32.partialorder %v615_v48, 0.0 }
 0x378   : > { %v617_v51 = vmul.f32 0.3275911, %v616_v50  ;;  %v630_v53 = vsub.f32 0.0, %v616_v50 }
 0x37a   : > { %v618_v52 = vadd.f32 1.0, %v617_v51  ;;  %v631_v55 = vmul.f32 %v630_v53, %v616_v50 }
 0x37c   : > { %936 = vrcp.f32 %v618_v52  ;;  %v632_v58 = vmul.f32 1.442695, %v631_v55 }
 0x37e   : > { %938 = vpow2.f32 %v632_v58 }
 0x386   : > { %v937_v54 = vpop.eup %936 }
 0x387   : > { %v621_v56 = vmul.f32 1.0614054, %v937_v54 }
 0x388   : > { %v939_v2 = vpop.eup %938 }
 0x389   : > { %v622_v57 = vadd.f32 -1.4531521, %v621_v56 }
 0x38b   : > { %v623_v59 = vmul.f32 %v937_v54, %v622_v57 }
 0x38d   : > { %v624_v60 = vadd.f32 1.4214138, %v623_v59 }
 0x38f   : > { %v625_v61 = vmul.f32 %v937_v54, %v624_v60 }
 0x391   : > { %v626_v62 = vadd.f32 -0.28449672, %v625_v61 }
 0x393   : > { %v627_v63 = vmul.f32 %v937_v54, %v626_v62 }
 0x395   : > { %v628_v0 = vadd.f32 0.2548296, %v627_v63 }
 0x397   : > { %v629_v1 = vmul.f32 %v937_v54, %v628_v0 }
 0x399   : > { %v634_v3 = vmul.f32 %v939_v2, %v629_v1 }
 0x39b   : > { %v635_v4 = vsub.f32 1.0, %v634_v3 }
 0x39d   : > { %v637_v5 = vsub.f32 0.0, %v635_v4 }
 0x39f   : > { %v638_v6 = vsel %vm636_vm5, %v635_v4, %v637_v5 }
 0x3a0   : > { %v640_v8 = vadd.f32 1.0, %v638_v6 }
 0x3a2   : > { %v641_v9 = vmul.f32 %v640_v8, %v639_v7 }
 0x3a4   : > { %v642_v10 = vpack.c.bf16 %v641_v9, %v641_v9 }
 0x3a6   : > { %891 = vmatmul.mubr.msk.bf16.vlgmr.msra.gmra.mrb[0].mxu0 %vm675_vm6, %v642_v10 }
 0x479   : > { %v713_v11 = vpop.f32.mrb[0].mxu0 }
 0x47a   : > { %v719_v13 = vadd.f32 %v713_v11, %v1074_v19  ;;  %v892_v14 = vpop.f32.mrb[1].mxu0 }
 0x47b   : > { %v716_v15 = vpop.f32.mrb[2].mxu0 }
 0x47c   : > { %v727_v16 = vadd.f32 %v851_v12, %v719_v13  ;;  %v893_v17 = vpop.f32.mrb[3].mxu0 }
 0x47e   : > { %728 = vst.msk [vmem:[%s416_s25] sm:$0xff] %vm473_vm4, %v727_v16 }
 0x47f PF: > { %s20_s15 = sadd.s32 1, %s962_s15   ;;  %s1142_s13 = smov %s958_s14 }
 0x480   : > { %p17_p5 = scmp.ge.s32.totalorder %s20_s15, 4   ;;  %s1143_s14 = smov %s1145_s16 }
 0x482   :  { %19 = sbr.rel (!%p17_p5) target bundleno = 2 (0x2), region = 96 }

</bundles_post_ra>
